<compile_context>
chip_gen: v6e
topology: v6e:2x2x1
jax: 0.10.0
libtpu: 0.0.40
codegen_flags: <defaults>
</compile_context>

<pallas_src>
import functools

import jax
import jax.numpy as jnp
import numpy as np
from jax import lax
from jax.experimental import pallas as pl
from jax.experimental.pallas import tpu as pltpu


def _cross_attn_kernel(x1_ref, x2_ref, wq_ref, wkv_ref, wout_ref, bout_ref,
                       qmask_ref, omask_ref, bbias_ref, o_ref, *, heads,
                       rows_q):
    """One batch-block of fused cross-attention.

    In-kernel shapes (I = 2*inner, D = model dim):
      x1_ref    (rows_q,  D)  bf16   query tokens  (block_b*L1 rows)
      x2_ref    (rows_kv, D)  bf16   key/value tokens (block_b*L2 rows)
      wq_ref    (D, I)        bf16   [Wq*scale | 0]   (v-half zero)
      wkv_ref   (D, I)        bf16   fused to_kv weight [Wk | Wv]
      wout_ref  (I, D)        bf16   [0 ; Wout]       (k-half rows zero)
      bout_ref  (1, D)        f32
      qmask_ref (heads, I)    bf16   row h: 1 on head-h k-columns, else 0
      omask_ref (heads, I)    f32    row h: 1 on head-h v-columns, else 0
      bbias_ref (heads*rows_q, rows_kv) f32   0 / -1e30 cross-batch bias
    """
    # --- projections: two MXU matmuls, bf16 operands, f32 accumulation -------
    q = jnp.dot(x1_ref[...], wq_ref[...],
                preferred_element_type=jnp.float32)            # (rows_q, I), v-half 0
    kv = jnp.dot(x2_ref[...], wkv_ref[...],
                 preferred_element_type=jnp.float32)           # (rows_kv, I)
    q_bf = q.astype(jnp.bfloat16)
    kv_bf = kv.astype(jnp.bfloat16)

    # --- block-diagonal Q: row block h = q masked to head h's k-columns ------
    # (K and V are consumed unreplicated; only q is tiled over heads.)
    q_bd = jnp.concatenate(
        [q_bf * qmask_ref[h:h + 1, :] for h in range(heads)], axis=0)
    # (heads*rows_q, I)

    # --- scores + exact per-(head, query) softmax -----------------------------
    # s[h*rows_q + i, j] = scale * <q_h[i], k_h[j]>   (v-columns contribute 0)
    s = lax.dot_general(q_bd, kv_bf, (((1,), (1,)), ((), ())),
                        preferred_element_type=jnp.float32)    # (heads*rows_q, rows_kv)
    s = s + bbias_ref[...]                                     # cross-batch mask: one add
    m = jnp.max(s, axis=-1, keepdims=True)                     # true per-head row max
    p = jnp.exp(s - m)
    denom = jnp.sum(p, axis=-1, keepdims=True)                 # >= 1 by construction
    recip = pl.reciprocal(denom, approx=True)                  # EUP slot (doc'd ~1e-3 err)

    # --- attention output: P @ [K|V]; only the V-half is useful --------------
    o_full = jnp.dot(p.astype(jnp.bfloat16), kv_bf,
                     preferred_element_type=jnp.float32)       # (heads*rows_q, I)
    o_full = o_full * recip                                    # normalize

    # collapse head row-blocks, selecting head h's v-columns
    o = o_full[0:rows_q, :] * omask_ref[0:1, :]
    for h in range(1, heads):
        o = o + o_full[h * rows_q:(h + 1) * rows_q, :] * omask_ref[h:h + 1, :]
    # (rows_q, I): k-half zero, v-half = attention output in (l, heads*dim_head) layout

    # --- output projection (zero k-half rows of Wout_pad kill the k-half) ----
    out = jnp.dot(o.astype(jnp.bfloat16), wout_ref[...],
                  preferred_element_type=jnp.float32)          # (rows_q, D)
    o_ref[...] = (out + bout_ref[...]).astype(o_ref.dtype)


def _is_two_core_chip():
    """True on chips with two TensorCores per chip (v7x); False otherwise."""
    try:
        kind = jax.devices()[0].device_kind.lower()
        return ("v7" in kind) or ("7x" in kind)
    except Exception:
        return False


def _pick_block_b(batch, l1, l2, *, heads, two_core, max_attn_rows=512):
    """Largest batch block with (8,128)-legal block shapes and a bounded
    (heads*block_b*L1) attention-row count (score/prob tiles and masked filler
    grow ~quadratically with block_b).  >=2 grid steps are only required on
    two-TensorCore chips (v7x); single-TC v5e/v6e prefer one fat step.
    Prefers a lane-aligned rows_kv (multiple of 128)."""
    divisors = [bb for bb in range(1, batch + 1) if batch % bb == 0]
    cands = [bb for bb in divisors if (bb * l1) % 8 == 0 and (bb * l2) % 8 == 0]
    if not cands:
        return batch            # whole-array blocks (block dims == full array dims)
    good = [bb for bb in cands
            if heads * bb * l1 <= max_attn_rows
            and not (two_core and batch > 1 and batch // bb < 2)]
    if good:
        good.sort(key=lambda bb: (((bb * l2) % 128) == 0, bb))
        return good[-1]
    return min(cands)


def cross_attention(x1, x2, wq, wkv, wout, bout, *, heads, dim_head,
                    block_b=None):
    """Pallas cross-attention. x1:(B,L1,D), x2:(B,L2,D) -> (B,L1,D)."""
    B, L1, D = x1.shape
    _, L2, _ = x2.shape
    inner = heads * dim_head
    two_inner = 2 * inner
    scale = dim_head ** (-0.5)
    out_dtype = x1.dtype

    if block_b is None:
        block_b = _pick_block_b(B, L1, L2, heads=heads,
                                two_core=_is_two_core_chip())
    assert B % block_b == 0
    rows_q = block_b * L1
    rows_kv = block_b * L2

    # ---- host-side constants (all VMEM-resident across grid steps) ----------
    # Softmax scale folded into Wq; Wq zero-padded to (D, 2*inner) (zero v-half)
    # and Wout zero-padded to (2*inner, D) (zero k-half) so the fused to_kv
    # projection result is never sliced on-chip.  Everything pre-cast to bf16.
    wq_pad = jnp.concatenate(
        [wq.astype(jnp.float32) * scale, jnp.zeros((D, inner), jnp.float32)],
        axis=1).astype(jnp.bfloat16)
    wout_pad = jnp.concatenate(
        [jnp.zeros((inner, D), jnp.float32), wout.astype(jnp.float32)],
        axis=0).astype(jnp.bfloat16)
    wkv_bf = wkv.astype(jnp.bfloat16)
    bout2d = bout.reshape(1, D).astype(jnp.float32)

    # Per-head column-selection masks (heads, 2*inner).
    qmask_np = np.zeros((heads, two_inner), np.float32)
    omask_np = np.zeros((heads, two_inner), np.float32)
    for h in range(heads):
        qmask_np[h, h * dim_head:(h + 1) * dim_head] = 1.0
        omask_np[h, inner + h * dim_head: inner + (h + 1) * dim_head] = 1.0
    qmask = jnp.asarray(qmask_np, dtype=jnp.bfloat16)
    omask = jnp.asarray(omask_np, dtype=jnp.float32)

    # Additive cross-batch bias (0 / -1e30) precomputed for this block shape:
    # the kernel applies it with a single add (no iota/divide/select on the VPU).
    qb = np.arange(rows_q) // L1
    kb = np.arange(rows_kv) // L2
    bias_np = np.where(qb[:, None] == kb[None, :], 0.0, -1e30).astype(np.float32)
    bbias = jnp.asarray(np.tile(bias_np, (heads, 1)))       # (heads*rows_q, rows_kv)

    # Inputs: flatten (B, L, D) -> (B*L, D) and cast to bf16 once (halves DMA).
    x1_flat = x1.reshape(B * L1, D).astype(jnp.bfloat16)
    x2_flat = x2.reshape(B * L2, D).astype(jnp.bfloat16)

    kernel = functools.partial(_cross_attn_kernel, heads=heads, rows_q=rows_q)
    const = lambda i: (0, 0)

    # TODO(synk): for large L1/L2/heads, add an L1 grid axis and budget the f32
    # (heads*rows_q, rows_kv) score/prob tiles against v7x's 64 MiB VMEM
    # (CompilerParams(vmem_limit_bytes=...)); the current block picker only
    # caps heads*block_b*L1.
    out_flat = pl.pallas_call(
        kernel,
        out_shape=jax.ShapeDtypeStruct((B * L1, D), out_dtype),
        grid_spec=pltpu.PrefetchScalarGridSpec(
            num_scalar_prefetch=0,
            grid=(B // block_b,),
            in_specs=[
                pl.BlockSpec((rows_q, D), lambda i: (i, 0)),       # x1 rows
                pl.BlockSpec((rows_kv, D), lambda i: (i, 0)),      # x2 rows
                pl.BlockSpec((D, two_inner), const),               # Wq (padded, scaled)
                pl.BlockSpec((D, two_inner), const),               # Wkv (fused)
                pl.BlockSpec((two_inner, D), const),               # Wout (padded)
                pl.BlockSpec((1, D), const),                       # bout
                pl.BlockSpec((heads, two_inner), const),           # q head mask
                pl.BlockSpec((heads, two_inner), const),           # out head mask
                pl.BlockSpec((heads * rows_q, rows_kv), const),    # cross-batch bias
            ],
            out_specs=pl.BlockSpec((rows_q, D), lambda i: (i, 0)),
        ),
        compiler_params=pltpu.CompilerParams(
            dimension_semantics=("parallel",)),
    )(x1_flat, x2_flat, wq_pad, wkv_bf, wout_pad, bout2d, qmask, omask, bbias)

    return out_flat.reshape(B, L1, D)


def cross_attention_ref(x1, x2, wq, wkv, wout, bout, *, heads, dim_head):
    """Pure-JAX (f32) reference matching the PyTorch forward pass."""
    inner = heads * dim_head
    scale = dim_head ** (-0.5)
    q = x1 @ wq                                     # (B, L1, inner)
    kv = x2 @ wkv                                   # (B, L2, 2*inner)
    k, v = kv[..., :inner], kv[..., inner:]

    def split_heads(t):
        b, l, n = t.shape
        return t.reshape(b, l, heads, dim_head).transpose(0, 2, 1, 3)

    q, k, v = map(split_heads, (q, k, v))
    attn = jnp.einsum('bhid,bhjd->bhij', q, k) * scale
    attn = jax.nn.softmax(attn, axis=-1)
    o = jnp.einsum('bhij,bhjd->bhid', attn, v)
    b, h, l, d = o.shape
    o = o.transpose(0, 2, 1, 3).reshape(b, l, h * d)
    return o @ wout + bout


if __name__ == "__main__":
    # Small shapes consistent with the module: dim=32, heads=4, dim_head=8.
    B, L1, L2, D = 8, 16, 16, 32
    heads, dim_head = 4, 8
    inner = heads * dim_head

    key = jax.random.PRNGKey(0)
    k_x1, k_x2, k_wq, k_wkv, k_wout, k_bout = jax.random.split(key, 6)

    x1 = jax.random.normal(k_x1, (B, L1, D), dtype=jnp.float32)
    x2 = jax.random.normal(k_x2, (B, L2, D), dtype=jnp.float32)

    # nn.Linear weights, pre-transposed so the kernel computes x @ W directly
    # (to_q / to_kv have no bias; to_out has one).
    wq = 0.1 * jax.random.normal(k_wq, (D, inner), dtype=jnp.float32)
    wkv = 0.1 * jax.random.normal(k_wkv, (D, 2 * inner), dtype=jnp.float32)
    wout = 0.1 * jax.random.normal(k_wout, (inner, D), dtype=jnp.float32)
    bout = 0.1 * jax.random.normal(k_bout, (D,), dtype=jnp.float32)

    out = cross_attention(x1, x2, wq, wkv, wout, bout,
                          heads=heads, dim_head=dim_head)
    out = jax.block_until_ready(out)

    ref = cross_attention_ref(x1, x2, wq, wkv, wout, bout,
                              heads=heads, dim_head=dim_head)
    # bf16 MXU operands/inputs (f32 accumulation) + approx reciprocal -> looser
    # tolerance than a pure-f32 comparison.
    np.testing.assert_allclose(np.asarray(out), np.asarray(ref),
                               rtol=2e-2, atol=2e-2)

    # NOTE: attn_drop / proj_drop are never applied in the module's forward
    # (and would be identity at p=0.0 in eval mode), so no dropout here.
    print("KERNEL_OK")
</pallas_src>

<mosaic_0001>
module attributes {stable_mosaic.version = 11 : i64} {
  func.func @_cross_attn_kernel(%arg0: i32, %arg1: memref<128x32xbf16, #tpu.memory_space<vmem>>, %arg2: memref<128x32xbf16, #tpu.memory_space<vmem>>, %arg3: memref<32x64xbf16, #tpu.memory_space<vmem>>, %arg4: memref<32x64xbf16, #tpu.memory_space<vmem>>, %arg5: memref<64x32xbf16, #tpu.memory_space<vmem>>, %arg6: memref<1x32xf32, #tpu.memory_space<vmem>>, %arg7: memref<4x64xbf16, #tpu.memory_space<vmem>>, %arg8: memref<4x64xf32, #tpu.memory_space<vmem>>, %arg9: memref<512x128xf32, #tpu.memory_space<vmem>>, %arg10: memref<128x32xf32, #tpu.memory_space<vmem>>) attributes {dimension_semantics = [#tpu.dimension_semantics<parallel>], iteration_bounds = array<i64: 1>, scalar_prefetch = 0 : i64, scratch_operands = 0 : i64, tpu.core_type = #tpu.core_type<tc>, window_params = [{transform_indices = @transform_0, window_bounds = array<i64: 128, 32>}, {transform_indices = @transform_1, window_bounds = array<i64: 128, 32>}, {pipeline_mode = #tpu.pipeline_mode<synchronous>, transform_indices = @transform_2, window_bounds = array<i64: 32, 64>}, {pipeline_mode = #tpu.pipeline_mode<synchronous>, transform_indices = @transform_3, window_bounds = array<i64: 32, 64>}, {pipeline_mode = #tpu.pipeline_mode<synchronous>, transform_indices = @transform_4, window_bounds = array<i64: 64, 32>}, {pipeline_mode = #tpu.pipeline_mode<synchronous>, transform_indices = @transform_5, window_bounds = array<i64: 1, 32>}, {pipeline_mode = #tpu.pipeline_mode<synchronous>, transform_indices = @transform_6, window_bounds = array<i64: 4, 64>}, {pipeline_mode = #tpu.pipeline_mode<synchronous>, transform_indices = @transform_7, window_bounds = array<i64: 4, 64>}, {pipeline_mode = #tpu.pipeline_mode<synchronous>, transform_indices = @transform_8, window_bounds = array<i64: 512, 128>}, {transform_indices = @transform_9, window_bounds = array<i64: 128, 32>}]} {
    %c0 = arith.constant 0 : index
    %c0_0 = arith.constant 0 : index
    %0 = vector.load %arg1[%c0, %c0_0] : memref<128x32xbf16, #tpu.memory_space<vmem>>, vector<128x32xbf16>
    %c0_1 = arith.constant 0 : index
    %c0_2 = arith.constant 0 : index
    %1 = vector.load %arg3[%c0_1, %c0_2] : memref<32x64xbf16, #tpu.memory_space<vmem>>, vector<32x64xbf16>
    %cst = arith.constant dense<0.000000e+00> : vector<128x64xf32>
    %2 = tpu.matmul %0, %1, %cst {dimension_numbers = #tpu.dot_dimension_numbers<[1], [0], [0], [1], [0, 0, 1, 1], [], []>} : vector<128x32xbf16>, vector<32x64xbf16>, vector<128x64xf32> -> vector<128x64xf32>
    %c0_3 = arith.constant 0 : index
    %c0_4 = arith.constant 0 : index
    %3 = vector.load %arg2[%c0_3, %c0_4] : memref<128x32xbf16, #tpu.memory_space<vmem>>, vector<128x32xbf16>
    %c0_5 = arith.constant 0 : index
    %c0_6 = arith.constant 0 : index
    %4 = vector.load %arg4[%c0_5, %c0_6] : memref<32x64xbf16, #tpu.memory_space<vmem>>, vector<32x64xbf16>
    %cst_7 = arith.constant dense<0.000000e+00> : vector<128x64xf32>
    %5 = tpu.matmul %3, %4, %cst_7 {dimension_numbers = #tpu.dot_dimension_numbers<[1], [0], [0], [1], [0, 0, 1, 1], [], []>} : vector<128x32xbf16>, vector<32x64xbf16>, vector<128x64xf32> -> vector<128x64xf32>
    %6 = arith.truncf %2 : vector<128x64xf32> to vector<128x64xbf16>
    %7 = arith.truncf %5 : vector<128x64xf32> to vector<128x64xbf16>
    %c0_8 = arith.constant 0 : index
    %c0_9 = arith.constant 0 : index
    %8 = vector.load %arg7[%c0_8, %c0_9] : memref<4x64xbf16, #tpu.memory_space<vmem>>, vector<1x64xbf16>
    %9 = vector.broadcast %8 : vector<1x64xbf16> to vector<128x64xbf16>
    %10 = arith.mulf %6, %9 : vector<128x64xbf16>
    %c1 = arith.constant 1 : index
    %c0_10 = arith.constant 0 : index
    %11 = vector.load %arg7[%c1, %c0_10] : memref<4x64xbf16, #tpu.memory_space<vmem>>, vector<1x64xbf16>
    %12 = vector.broadcast %11 : vector<1x64xbf16> to vector<128x64xbf16>
    %13 = arith.mulf %6, %12 : vector<128x64xbf16>
    %c2 = arith.constant 2 : index
    %c0_11 = arith.constant 0 : index
    %14 = vector.load %arg7[%c2, %c0_11] : memref<4x64xbf16, #tpu.memory_space<vmem>>, vector<1x64xbf16>
    %15 = vector.broadcast %14 : vector<1x64xbf16> to vector<128x64xbf16>
    %16 = arith.mulf %6, %15 : vector<128x64xbf16>
    %c3 = arith.constant 3 : index
    %c0_12 = arith.constant 0 : index
    %17 = vector.load %arg7[%c3, %c0_12] : memref<4x64xbf16, #tpu.memory_space<vmem>>, vector<1x64xbf16>
    %18 = vector.broadcast %17 : vector<1x64xbf16> to vector<128x64xbf16>
    %19 = arith.mulf %6, %18 : vector<128x64xbf16>
    %20 = tpu.concatenate %10, %13, %16, %19 in 0 : vector<128x64xbf16>, vector<128x64xbf16>, vector<128x64xbf16>, vector<128x64xbf16> -> vector<512x64xbf16>
    %cst_13 = arith.constant dense<0.000000e+00> : vector<512x128xf32>
    %21 = tpu.matmul %20, %7, %cst_13 {dimension_numbers = #tpu.dot_dimension_numbers<[1], [1], [0], [0], [0, 0, 1, 0], [], []>} : vector<512x64xbf16>, vector<128x64xbf16>, vector<512x128xf32> -> vector<512x128xf32>
    %c0_14 = arith.constant 0 : index
    %c0_15 = arith.constant 0 : index
    %22 = vector.load %arg9[%c0_14, %c0_15] : memref<512x128xf32, #tpu.memory_space<vmem>>, vector<512x128xf32>
    %23 = arith.addf %21, %22 : vector<512x128xf32>
    %cst_16 = arith.constant dense<0xFF800000> : vector<512xf32>
    %24 = vector.multi_reduction <maximumf>, %23, %cst_16 [1] : vector<512x128xf32> to vector<512xf32>
    %25 = vector.shape_cast %24 : vector<512xf32> to vector<512x1xf32>
    %26 = vector.broadcast %25 : vector<512x1xf32> to vector<512x128xf32>
    %27 = arith.subf %23, %26 : vector<512x128xf32>
    %28 = math.exp %27 : vector<512x128xf32>
    %cst_17 = arith.constant dense<0.000000e+00> : vector<512xf32>
    %29 = vector.multi_reduction <add>, %28, %cst_17 [1] : vector<512x128xf32> to vector<512xf32>
    %30 = vector.shape_cast %29 : vector<512xf32> to vector<512x1xf32>
    %31 = tpu.reciprocal %30 {approx = true} : vector<512x1xf32> -> vector<512x1xf32>
    %32 = arith.truncf %28 : vector<512x128xf32> to vector<512x128xbf16>
    %cst_18 = arith.constant dense<0.000000e+00> : vector<512x64xf32>
    %33 = tpu.matmul %32, %7, %cst_18 {dimension_numbers = #tpu.dot_dimension_numbers<[1], [0], [0], [1], [0, 0, 1, 1], [], []>} : vector<512x128xbf16>, vector<128x64xbf16>, vector<512x64xf32> -> vector<512x64xf32>
    %34 = vector.broadcast %31 : vector<512x1xf32> to vector<512x64xf32>
    %35 = arith.mulf %33, %34 : vector<512x64xf32>
    %36 = vector.extract_strided_slice %35 {offsets = [0, 0], sizes = [128, 64], strides = [1, 1]} : vector<512x64xf32> to vector<128x64xf32>
    %c0_19 = arith.constant 0 : index
    %c0_20 = arith.constant 0 : index
    %37 = vector.load %arg8[%c0_19, %c0_20] : memref<4x64xf32, #tpu.memory_space<vmem>>, vector<1x64xf32>
    %38 = vector.broadcast %37 : vector<1x64xf32> to vector<128x64xf32>
    %39 = arith.mulf %36, %38 : vector<128x64xf32>
    %40 = vector.extract_strided_slice %35 {offsets = [128, 0], sizes = [128, 64], strides = [1, 1]} : vector<512x64xf32> to vector<128x64xf32>
    %c1_21 = arith.constant 1 : index
    %c0_22 = arith.constant 0 : index
    %41 = vector.load %arg8[%c1_21, %c0_22] : memref<4x64xf32, #tpu.memory_space<vmem>>, vector<1x64xf32>
    %42 = vector.broadcast %41 : vector<1x64xf32> to vector<128x64xf32>
    %43 = arith.mulf %40, %42 : vector<128x64xf32>
    %44 = arith.addf %39, %43 : vector<128x64xf32>
    %45 = vector.extract_strided_slice %35 {offsets = [256, 0], sizes = [128, 64], strides = [1, 1]} : vector<512x64xf32> to vector<128x64xf32>
    %c2_23 = arith.constant 2 : index
    %c0_24 = arith.constant 0 : index
    %46 = vector.load %arg8[%c2_23, %c0_24] : memref<4x64xf32, #tpu.memory_space<vmem>>, vector<1x64xf32>
    %47 = vector.broadcast %46 : vector<1x64xf32> to vector<128x64xf32>
    %48 = arith.mulf %45, %47 : vector<128x64xf32>
    %49 = arith.addf %44, %48 : vector<128x64xf32>
    %50 = vector.extract_strided_slice %35 {offsets = [384, 0], sizes = [128, 64], strides = [1, 1]} : vector<512x64xf32> to vector<128x64xf32>
    %c3_25 = arith.constant 3 : index
    %c0_26 = arith.constant 0 : index
    %51 = vector.load %arg8[%c3_25, %c0_26] : memref<4x64xf32, #tpu.memory_space<vmem>>, vector<1x64xf32>
    %52 = vector.broadcast %51 : vector<1x64xf32> to vector<128x64xf32>
    %53 = arith.mulf %50, %52 : vector<128x64xf32>
    %54 = arith.addf %49, %53 : vector<128x64xf32>
    %55 = arith.truncf %54 : vector<128x64xf32> to vector<128x64xbf16>
    %c0_27 = arith.constant 0 : index
    %c0_28 = arith.constant 0 : index
    %56 = vector.load %arg5[%c0_27, %c0_28] : memref<64x32xbf16, #tpu.memory_space<vmem>>, vector<64x32xbf16>
    %cst_29 = arith.constant dense<0.000000e+00> : vector<128x32xf32>
    %57 = tpu.matmul %55, %56, %cst_29 {dimension_numbers = #tpu.dot_dimension_numbers<[1], [0], [0], [1], [0, 0, 1, 1], [], []>} : vector<128x64xbf16>, vector<64x32xbf16>, vector<128x32xf32> -> vector<128x32xf32>
    %c0_30 = arith.constant 0 : index
    %c0_31 = arith.constant 0 : index
    %58 = vector.load %arg6[%c0_30, %c0_31] : memref<1x32xf32, #tpu.memory_space<vmem>>, vector<1x32xf32>
    %59 = vector.broadcast %58 : vector<1x32xf32> to vector<128x32xf32>
    %60 = arith.addf %57, %59 : vector<128x32xf32>
    %c0_32 = arith.constant 0 : index
    %c0_33 = arith.constant 0 : index
    %61 = vector.load %arg10[%c0_32, %c0_33] : memref<128x32xf32, #tpu.memory_space<vmem>>, vector<128x32xf32>
    tpu.vector_store %arg10[%c0_32, %c0_33], %60 {strides = array<i32>} : memref<128x32xf32, #tpu.memory_space<vmem>>, vector<128x32xf32>,
    return
  }
  func.func @transform_0(%arg0: i32) -> (i32, i32) {
    %c0_i32 = arith.constant 0 : i32
    %c0_i32_0 = arith.constant 0 : i32
    return %arg0, %c0_i32 : i32, i32
  }
  func.func @transform_1(%arg0: i32) -> (i32, i32) {
    %c0_i32 = arith.constant 0 : i32
    %c0_i32_0 = arith.constant 0 : i32
    return %arg0, %c0_i32 : i32, i32
  }
  func.func @transform_2(%arg0: i32) -> (i32, i32) {
    %c0_i32 = arith.constant 0 : i32
    %c0_i32_0 = arith.constant 0 : i32
    %c0_i32_1 = arith.constant 0 : i32
    return %c0_i32, %c0_i32_0 : i32, i32
  }
  func.func @transform_3(%arg0: i32) -> (i32, i32) {
    %c0_i32 = arith.constant 0 : i32
    %c0_i32_0 = arith.constant 0 : i32
    %c0_i32_1 = arith.constant 0 : i32
    return %c0_i32, %c0_i32_0 : i32, i32
  }
  func.func @transform_4(%arg0: i32) -> (i32, i32) {
    %c0_i32 = arith.constant 0 : i32
    %c0_i32_0 = arith.constant 0 : i32
    %c0_i32_1 = arith.constant 0 : i32
    return %c0_i32, %c0_i32_0 : i32, i32
  }
  func.func @transform_5(%arg0: i32) -> (i32, i32) {
    %c0_i32 = arith.constant 0 : i32
    %c0_i32_0 = arith.constant 0 : i32
    %c0_i32_1 = arith.constant 0 : i32
    return %c0_i32, %c0_i32_0 : i32, i32
  }
  func.func @transform_6(%arg0: i32) -> (i32, i32) {
    %c0_i32 = arith.constant 0 : i32
    %c0_i32_0 = arith.constant 0 : i32
    %c0_i32_1 = arith.constant 0 : i32
    return %c0_i32, %c0_i32_0 : i32, i32
  }
  func.func @transform_7(%arg0: i32) -> (i32, i32) {
    %c0_i32 = arith.constant 0 : i32
    %c0_i32_0 = arith.constant 0 : i32
    %c0_i32_1 = arith.constant 0 : i32
    return %c0_i32, %c0_i32_0 : i32, i32
  }
  func.func @transform_8(%arg0: i32) -> (i32, i32) {
    %c0_i32 = arith.constant 0 : i32
    %c0_i32_0 = arith.constant 0 : i32
    %c0_i32_1 = arith.constant 0 : i32
    return %c0_i32, %c0_i32_0 : i32, i32
  }
  func.func @transform_9(%arg0: i32) -> (i32, i32) {
    %c0_i32 = arith.constant 0 : i32
    %c0_i32_0 = arith.constant 0 : i32
    return %arg0, %c0_i32 : i32, i32
  }
}

</mosaic_0001>

<bundles_post_ra>
// kernel: tpu_custom_call.1
= control target key start
LH: loop header
LB: loop body
LE: loop exit
PB: predicated region body
PF: predicated region fallthrough
CT: control target
= control target key end

     0   :  { %14 = vsyncpa [#allocation3], 0  ;;  %s2938_s30 = smov [#allocation2]   ;;  %s3974_s0 = inlined_call_operand.vmem [shape: bf16[128,32], index: 0, kind: input, shape index: {}]   ;;  %s3975_s1 = inlined_call_operand.vmem [shape: bf16[128,32], index: 1, kind: input, shape index: {}]   ;;  %s3976_s2 = inlined_call_operand.vmem [shape: bf16[32,64], index: 2, kind: input, shape index: {}]   ;;  %s3977_s3 = inlined_call_operand.vmem [shape: bf16[32,64], index: 3, kind: input, shape index: {}]   ;;  %s3978_s4 = inlined_call_operand.vmem [shape: bf16[64,32], index: 4, kind: input, shape index: {}]   ;;  %s3979_s5 = inlined_call_operand.vmem [shape: f32[1,32], index: 5, kind: input, shape index: {}]   ;;  %s3980_s6 = inlined_call_operand.vmem [shape: bf16[4,64], index: 6, kind: input, shape index: {}]   ;;  %s3981_s7 = inlined_call_operand.vmem [shape: f32[4,64], index: 7, kind: input, shape index: {}]   ;;  %s3982_s8 = inlined_call_operand.hbm [shape: f32[512,128], index: 8, kind: input, shape index: {}]   ;;  %s3983_s9 = inlined_call_operand.vmem [shape: f32[128,32], index: 9, kind: output, shape index: {}]  }
   0x1   :  { %s36_s10 = sshll.u32 %s2938_s30, 4  ;;  %s37_s10 = int_to_ptr.vmem [resolvable:$true] %s36_s10 }
   0x2   :  { %s2924_s11 = scalar_lea.vmem %s37_s10, 8192  ;;  %p2929_p1 = scmp.lt.s32.totalorder %s37_s10, %s37_s10 }
   0x3   :  { %p2925_p0 = scmp.ne.s32.totalorder %s37_s10, %s2924_s11  ;;  %p2930_p2 = scmp.lt.s32.totalorder %s2924_s11, %s2924_s11 }
   0x5   :  { %p2931_p3 = por %p2930_p2, %p2929_p1 }
   0x7   :  { %p2932_p4 = pnand %p2931_p3, %p2925_p0 }
   0x9   :  { %2935 = shalt.err (!%p2932_p4)
}
   0xa   :  { %s2939_s12 = smov 128   ;;  %s2940_s13 = smov 8  }
   0xb   :  { %42 = dma.hbm_to_vmem [thread:$0]  %s3982_s8, 8192, %s37_s10, [#allocation3], %s2939_s12, %s2939_s12, %s2940_s13  }
   0xc   :  { %2936 = dma.done.wait [#allocation3], 8192  }
   0xd   :  { %2937 = vsyncadd [#allocation3], 4294959104  ;;  %v2636_v0 = vld [vmem:[%s3977_s3 + $0x8] sm:$0xff]   ;;  %v2637_v1 = vld [vmem:[%s3977_s3] sm:$0xff]   ;;  %vm119_vm0 = vcmask 261120   ;;  %v454_v20 = vlaneseq  ;;  %vm576_vm1 = vcmask 523264  }
   0xe   :  { %2421 = vmatprep.subr.bf16.mxu1 %v2636_v0  ;;  %v2638_v2 = vld [vmem:[%s3975_s1] sm:$0xff]   ;;  %v2639_v3 = vld [vmem:[%s3975_s1 + $0x8] sm:$0xff]   ;;  %v2640_v4 = vld [vmem:[%s3975_s1 + $0x10] sm:$0xff]  }
   0xf   :  { %2422 = vmatpush3.bf16.msra.mxu1 %v2636_v0  ;;  %2425 = vmatprep.mubr.msk.bf16.mxu1 %vm119_vm0, %v2638_v2  ;;  %v2646_v5 = vld [vmem:[%s3976_s2 + $0x8] sm:$0xff]   ;;  %v2647_v6 = vld [vmem:[%s3976_s2] sm:$0xff]   ;;  %v2641_v8 = vld [vmem:[%s3975_s1 + $0x18] sm:$0xff]   ;;  %v455_v22 = vshrl.u32 %v454_v20, 7 }
  0x10   :  { %2423 = vmatprep.subr.bf16.mxu1 %v2637_v1  ;;  %2401 = vmatprep.subr.bf16.mxu0 %v2646_v5  ;;  %v2648_v7 = vld [vmem:[%s3974_s0] sm:$0xff]   ;;  %v2649_v10 = vld [vmem:[%s3974_s0 + $0x8] sm:$0xff]   ;;  %v2650_v11 = vld [vmem:[%s3974_s0 + $0x10] sm:$0xff]  }
  0x11   :  { %2402 = vmatpush3.bf16.msra.mxu0 %v2646_v5  ;;  %2405 = vmatprep.mubr.msk.bf16.mxu0 %vm119_vm0, %v2648_v7  ;;  %v2642_v9 = vld [vmem:[%s3975_s1 + $0x20] sm:$0xff]   ;;  %v2643_v12 = vld [vmem:[%s3975_s1 + $0x28] sm:$0xff]   ;;  %v2644_v13 = vld [vmem:[%s3975_s1 + $0x30] sm:$0xff]   ;;  %v456_v24 = vsub.s32 0, %v455_v22  ;;  %v487_v38 = vsub.s32 1, %v455_v22 }
  0x12   :  { %2403 = vmatprep.subr.bf16.mxu0 %v2647_v6  ;;  %v2651_v14 = vld [vmem:[%s3974_s0 + $0x18] sm:$0xff]   ;;  %v2652_v15 = vld [vmem:[%s3974_s0 + $0x20] sm:$0xff]   ;;  %v2653_v17 = vld [vmem:[%s3974_s0 + $0x28] sm:$0xff]  }
  0x13   :  { %2424 = vmatpush3.bf16.msra.mxu1 %v2637_v1  ;;  %v2645_v16 = vld [vmem:[%s3975_s1 + $0x38] sm:$0xff]   ;;  %v2654_v18 = vld [vmem:[%s3974_s0 + $0x30] sm:$0xff]   ;;  %v450_v21 = vld [vmem:[%s3980_s6] sm:$0x1] }
  0x14   :  { %v2655_v19 = vld [vmem:[%s3974_s0 + $0x38] sm:$0xff]   ;;  %v466_v23 = vshrl.u32 %v450_v21, 16  ;;  %v481_v29 = vld [vmem:[%s3980_s6] sm:$0x2]  ;;  %v452_v34 = vpack.i.b16 %v450_v21, %v450_v21 }
  0x15   :  { %2404 = vmatpush3.bf16.msra.mxu0 %v2647_v6  ;;  %v497_v32 = vshrl.u32 %v481_v29, 16  ;;  %v483_v37 = vpack.i.b16 %v481_v29, %v481_v29 }
  0x16   :  { %2426 = vmatmul.mubr.msk.bf16.vlgmr.msra.gmra.mxu1 %vm119_vm0, %v2639_v3  ;;  %v467_v25 = vpack.i.b16 %v466_v23, %v466_v23  ;;  %v3092_v42 = vrot.slane %v452_v34, %v456_v24 }
  0x17   :  { %2429 = vmatprep.mubr.msk.bf16.mxu1 %vm119_vm0, %v2640_v4  ;;  %v498_v39 = vpack.i.b16 %v497_v32, %v497_v32  ;;  %v3096_v45 = vrot.slane %v483_v37, %v487_v38 }
  0x18   :  { %2406 = vmatmul.mubr.msk.bf16.vlgmr.msra.gmra.mxu0 %vm119_vm0, %v2649_v10  ;;  %v3073_v26 = vrot.slane %v467_v25, %v456_v24 }
  0x19   :  { %2409 = vmatprep.mubr.msk.bf16.mxu0 %vm119_vm0, %v2650_v11  ;;  %v3098_v46 = vrot.slane %v498_v39, %v487_v38 }
  0x1e   :  { %2430 = vmatmul.mubr.msk.bf16.gmra.mxu1 %vm119_vm0, %v2641_v8 }
  0x1f   :  { %2433 = vmatprep.mubr.msk.bf16.mxu1 %vm119_vm0, %v2642_v9 }
  0x20   :  { %2410 = vmatmul.mubr.msk.bf16.gmra.mxu0 %vm119_vm0, %v2651_v14 }
  0x21   :  { %2413 = vmatprep.mubr.msk.bf16.mxu0 %vm119_vm0, %v2652_v15 }
  0x26   :  { %2434 = vmatmul.mubr.msk.bf16.gmra.mxu1 %vm119_vm0, %v2643_v12 }
  0x27   :  { %2437 = vmatprep.mubr.msk.bf16.mxu1 %vm119_vm0, %v2644_v13 }
  0x28   :  { %2414 = vmatmul.mubr.msk.bf16.gmra.mxu0 %vm119_vm0, %v2653_v17 }
  0x29   :  { %2417 = vmatprep.mubr.msk.bf16.mxu0 %vm119_vm0, %v2654_v18 }
  0x2e   :  { %2438 = vmatmul.mubr.msk.bf16.gmra.mxu1 %vm119_vm0, %v2645_v16 }
  0x30   :  { %2418 = vmatmul.mubr.msk.bf16.gmra.mxu0 %vm119_vm0, %v2655_v19 }
  0xd6   :  { %v3075_v27 = vpop.f32.mrf.mxu1 }
  0xd8   :  { %v3077_v28 = vpop.f32.mrf.mxu1  ;;  %v2407_v36 = vpop.f32.mrf.mxu0 }
  0xda   :  { %v3082_v30 = vpop.f32.mrf.mxu1  ;;  %v178_v41 = vpop.f32.mrf.mxu0 }
  0xdc   :  { %v3084_v31 = vpop.f32.mrf.mxu1  ;;  %v2408_v44 = vpop.f32.mrf.mxu0 }
  0xdd   :  { %v3100_v47 = vpack.c.bf16 %v2408_v44, %v2407_v36 }
  0xde   :  { %v3086_v33 = vpop.f32.mrf.mxu1  ;;  %v181_v49 = vpop.f32.mrf.mxu0 }
  0xdf   :  { %v459_v50 = vmul.bf16 %v3092_v42, %v3100_v47  ;;  %v3104_v51 = vpack.c.bf16 %v181_v49, %v178_v41  ;;  %v474_v52 = vmul.bf16 %v3073_v26, %v3100_v47  ;;  %v490_v55 = vmul.bf16 %v3096_v45, %v3100_v47 }
  0xe0   :  { %v3088_v35 = vpop.f32.mrf.mxu1  ;;  %v2411_v54 = vpop.f32.mrf.mxu0  ;;  %v505_v56 = vmul.bf16 %v3098_v46, %v3100_v47  ;;  %v512_v47 = vld [vmem:[#allocation2] sm:$0xff] }
  0xe1   :  { %v458_v57 = vmul.bf16 %v3092_v42, %v3104_v51  ;;  %v473_v58 = vmul.bf16 %v3073_v26, %v3104_v51  ;;  %v489_v59 = vmul.bf16 %v3096_v45, %v3104_v51  ;;  %v504_v60 = vmul.bf16 %v3098_v46, %v3104_v51 }
  0xe2   :  { %v3090_v40 = vpop.f32.mrf.mxu1  ;;  %v194_v62 = vpop.f32.mrf.mxu0 }
  0xe3   :  { %2457 = vmatprep.mubr.msk.bf16.mxu0 %vm576_vm1, %v458_v57  ;;  %v445_v49 = vpack.c.bf16 %v3090_v40, %v3086_v33  ;;  %v443_v33 = vpack.c.bf16 %v3082_v30, %v3075_v27  ;;  %v442_v40 = vpack.c.bf16 %v3084_v31, %v3077_v28 }
  0xe4   :  { %v3094_v43 = vpop.f32.mrf.mxu1  ;;  %v2412_v0 = vpop.f32.mrf.mxu0 }
  0xe5   :  { %v3121_v1 = vpack.c.bf16 %v2412_v0, %v2411_v54  ;;  %v444_v57 = vpack.c.bf16 %v3094_v43, %v3088_v35  ;;  %v683_v35 = vsel %vm576_vm1, %v445_v49, 0  ;;  %v677_v28 = vsel %vm576_vm1, %v443_v33, 0 }
  0xe6   :  { %v2435_v48 = vpop.f32.mrf.mxu1  ;;  %v197_v3 = vpop.f32.mrf.mxu0  ;;  %v674_v30 = vsel %vm576_vm1, %v442_v40, 0 }
  0xe7   :  { %v3123_v4 = vpack.c.bf16 %v197_v3, %v194_v62  ;;  %v492_v7 = vmul.bf16 %v3096_v45, %v3121_v1  ;;  %v507_v8 = vmul.bf16 %v3098_v46, %v3121_v1  ;;  %v680_v27 = vsel %vm576_vm1, %v444_v57, 0 }
  0xe8   :  { %v403_v53 = vpop.f32.mrf.mxu1  ;;  %v2415_v6 = vpop.f32.mrf.mxu0 }
  0xe9   :  { %v491_v9 = vmul.bf16 %v3096_v45, %v3123_v4  ;;  %v506_v10 = vmul.bf16 %v3098_v46, %v3123_v4  ;;  %v460_v31 = vmul.bf16 %v3092_v42, %v3123_v4  ;;  %v475_v3 = vmul.bf16 %v3073_v26, %v3123_v4 }
  0xea   :  { %v2436_v61 = vpop.f32.mrf.mxu1  ;;  %v210_v12 = vpop.f32.mrf.mxu0 }
  0xeb   :  { %v447_v24 = vpack.c.bf16 %v2436_v61, %v2435_v48 }
  0xec   :  { %v406_v63 = vpop.f32.mrf.mxu1  ;;  %v2416_v15 = vpop.f32.mrf.mxu0 }
  0xed   :  { %v3135_v18 = vpack.c.bf16 %v2416_v15, %v2415_v6  ;;  %v446_v36 = vpack.c.bf16 %v406_v63, %v403_v53  ;;  %v689_v61 = vsel %vm576_vm1, %v447_v24, 0  ;;  %v461_v63 = vmul.bf16 %v3092_v42, %v3121_v1 }
  0xee   :  { %v2439_v2 = vpop.f32.mrf.mxu1  ;;  %v213_v19 = vpop.f32.mrf.mxu0 }
  0xef   :  { %v3138_v20 = vpack.c.bf16 %v213_v19, %v210_v12  ;;  %v494_v22 = vmul.bf16 %v3096_v45, %v3135_v18  ;;  %v509_v23 = vmul.bf16 %v3098_v46, %v3135_v18  ;;  %v686_v62 = vsel %vm576_vm1, %v446_v36, 0  ;;  %v518_v12 = vld [vmem:[#allocation2 + $0x30] sm:$0xff] }
  0xf0   :  { %v419_v5 = vpop.f32.mrf.mxu1  ;;  %v2419_v21 = vpop.f32.mrf.mxu0 }
  0xf1   :  { %v493_v25 = vmul.bf16 %v3096_v45, %v3138_v20  ;;  %v508_v29 = vmul.bf16 %v3098_v46, %v3138_v20  ;;  %v462_v43 = vmul.bf16 %v3092_v42, %v3138_v20 }
  0xf2   :  { %v2440_v11 = vpop.f32.mrf.mxu1  ;;  %v226_v32 = vpop.f32.mrf.mxu0 }
  0xf3   :  { %v449_v13 = vpack.c.bf16 %v2440_v11, %v2439_v2  ;;  %v463_v2 = vmul.bf16 %v3092_v42, %v3135_v18 }
  0xf4   :  { %v422_v14 = vpop.f32.mrf.mxu1  ;;  %v2420_v34 = vpop.f32.mrf.mxu0 }
  0xf5   :  { %v448_v16 = vpack.c.bf16 %v422_v14, %v419_v5  ;;  %2625 = vmatprep.subr.msk.bf16.mxu0 %vm576_vm1, %v449_v13  ;;  %2521 = vmatprep.subr.bf16.mxu1 %v449_v13  ;;  %v695_v17 = vsel %vm576_vm1, %v449_v13, 0  ;;  %v3149_v38 = vpack.c.bf16 %v2420_v34, %v2419_v21  ;;  %v477_v5 = vmul.bf16 %v3073_v26, %v3138_v20  ;;  %v517_v14 = vld [vmem:[#allocation2 + $0x28] sm:$0xff]  ;;  %v520_v20 = vld [vmem:[#allocation2 + $0x40] sm:$0xff] }
  0xf6   :  { %2442 = vmatpush3.bf16.xpose.msra.mxu0 %v695_v17  ;;  %2522 = vmatpush3.bf16.msra.mxu1 %v449_v13  ;;  %v229_v39 = vpop.f32.mrf.mxu0 }
  0xf7   :  { %2626 = vmatprep.subr.msk.bf16.mxu0 %vm576_vm1, %v448_v16  ;;  %2523 = vmatprep.subr.bf16.mxu1 %v448_v16  ;;  %v692_v37 = vsel %vm576_vm1, %v448_v16, 0  ;;  %v3152_v41 = vpack.c.bf16 %v229_v39, %v226_v32  ;;  %v496_v44 = vmul.bf16 %v3096_v45, %v3149_v38  ;;  %v511_v48 = vmul.bf16 %v3098_v46, %v3149_v38  ;;  %v524_v39 = vld [vmem:[#allocation2 + $0x60] sm:$0xff] }
  0xf9   :  { %v495_v53 = vmul.bf16 %v3096_v45, %v3152_v41  ;;  %v510_v54 = vmul.bf16 %v3098_v46, %v3152_v41  ;;  %v464_v0 = vmul.bf16 %v3092_v42, %v3152_v41  ;;  %v479_v6 = vmul.bf16 %v3073_v26, %v3152_v41 }
  0xfa   :  { %2524 = vmatpush3.bf16.msra.mxu1 %v448_v16 }
  0xfb   :  { %2525 = vmatprep.subr.bf16.mxu1 %v447_v24 }
  0xfe   :  { %2444 = vmatpush3.bf16.xpose.msra.mxu0 %v692_v37  ;;  %2526 = vmatpush3.bf16.msra.mxu1 %v447_v24  ;;  %v523_v37 = vld [vmem:[#allocation2 + $0x58] sm:$0xff] }
  0xff   :  { %2627 = vmatprep.subr.msk.bf16.mxu0 %vm576_vm1, %v447_v24  ;;  %2527 = vmatprep.subr.bf16.mxu1 %v446_v36  ;;  %v522_v24 = vld [vmem:[#allocation2 + $0x50] sm:$0xff] }
 0x102   :  { %2528 = vmatpush3.bf16.msra.mxu1 %v446_v36 }
 0x103   :  { %2529 = vmatprep.subr.bf16.mxu1 %v445_v49 }
 0x106   :  { %2446 = vmatpush3.bf16.xpose.msra.mxu0 %v689_v61  ;;  %2530 = vmatpush3.bf16.msra.mxu1 %v445_v49 }
 0x107   :  { %2628 = vmatprep.subr.msk.bf16.mxu0 %vm576_vm1, %v446_v36  ;;  %2531 = vmatprep.subr.bf16.mxu1 %v444_v57 }
 0x10a   :  { %2532 = vmatpush3.bf16.msra.mxu1 %v444_v57 }
 0x10b   :  { %2533 = vmatprep.subr.bf16.mxu1 %v443_v33 }
 0x10e   :  { %2448 = vmatpush3.bf16.xpose.msra.mxu0 %v686_v62  ;;  %2534 = vmatpush3.bf16.msra.mxu1 %v443_v33 }
 0x10f   :  { %2629 = vmatprep.subr.msk.bf16.mxu0 %vm576_vm1, %v445_v49  ;;  %2535 = vmatprep.subr.bf16.mxu1 %v442_v40  ;;  %v526_v49 = vld [vmem:[#allocation2 + $0x70] sm:$0xff] }
 0x112   :  { %2536 = vmatpush3.bf16.msra.mxu1 %v442_v40 }
 0x116   :  { %2450 = vmatpush3.bf16.xpose.msra.mxu0 %v683_v35  ;;  %v528_v35 = vld [vmem:[#allocation2 + $0x80] sm:$0xff] }
 0x117   :  { %2630 = vmatprep.subr.msk.bf16.mxu0 %vm576_vm1, %v444_v57 }
 0x11e   :  { %2452 = vmatpush3.bf16.xpose.msra.mxu0 %v680_v27 }
 0x11f   :  { %2631 = vmatprep.subr.msk.bf16.mxu0 %vm576_vm1, %v443_v33 }
 0x126   :  { %2454 = vmatpush3.bf16.xpose.msra.mxu0 %v677_v28 }
 0x127   :  { %2632 = vmatprep.subr.msk.bf16.mxu0 %vm576_vm1, %v442_v40  ;;  %v527_v40 = vld [vmem:[#allocation2 + $0x78] sm:$0xff] }
 0x12e   :  { %2456 = vmatpush3.bf16.xpose.msra.mxu0 %v674_v30 }
 0x135   :  { %2458 = vmatmul.mubr.msk.bf16.vlgmr.msra.gmra.mxu0 %vm576_vm1, %v459_v50  ;;  %v465_v50 = vmul.bf16 %v3092_v42, %v3149_v38  ;;  %v476_v42 = vmul.bf16 %v3073_v26, %v3121_v1  ;;  %v513_v1 = vld [vmem:[#allocation2 + $0x8] sm:$0xff] }
 0x136   :  { %2461 = vmatprep.mubr.msk.bf16.mxu0 %vm576_vm1, %v460_v31  ;;  %v530_v31 = vld [vmem:[#allocation2 + $0x90] sm:$0xff] }
 0x13d   :  { %2462 = vmatmul.mubr.msk.bf16.gmra.mxu0 %vm576_vm1, %v461_v63  ;;  %v529_v63 = vld [vmem:[#allocation2 + $0x88] sm:$0xff] }
 0x13e   :  { %2465 = vmatprep.mubr.msk.bf16.mxu0 %vm576_vm1, %v462_v43 }
 0x145   :  { %2466 = vmatmul.mubr.msk.bf16.gmra.mxu0 %vm576_vm1, %v463_v2 }
 0x146   :  { %2469 = vmatprep.mubr.msk.bf16.mxu0 %vm576_vm1, %v464_v0 }
 0x14d   :  { %2470 = vmatmul.mubr.msk.bf16.gmra.mxu0 %vm576_vm1, %v465_v50 }
 0x14e   :  { %2473 = vmatprep.mubr.msk.bf16.mxu0 %vm576_vm1, %v473_v58  ;;  %v478_v58 = vmul.bf16 %v3073_v26, %v3135_v18  ;;  %v519_v18 = vld [vmem:[#allocation2 + $0x38] sm:$0xff] }
 0x155   :  { %2474 = vmatmul.mubr.msk.bf16.gmra.mxu0 %vm576_vm1, %v474_v52  ;;  %v480_v52 = vmul.bf16 %v3073_v26, %v3149_v38  ;;  %v514_v26 = vld [vmem:[#allocation2 + $0x10] sm:$0xff] }
 0x156   :  { %2477 = vmatprep.mubr.msk.bf16.mxu0 %vm576_vm1, %v475_v3  ;;  %v531_v3 = vld [vmem:[#allocation2 + $0x98] sm:$0xff] }
 0x15d   :  { %2478 = vmatmul.mubr.msk.bf16.gmra.mxu0 %vm576_vm1, %v476_v42 }
 0x15e   :  { %2481 = vmatprep.mubr.msk.bf16.mxu0 %vm576_vm1, %v477_v5  ;;  %v532_v5 = vld [vmem:[#allocation2 + $0xa0] sm:$0xff] }
 0x165   :  { %2482 = vmatmul.mubr.msk.bf16.gmra.mxu0 %vm576_vm1, %v478_v58 }
 0x166   :  { %2485 = vmatprep.mubr.msk.bf16.mxu0 %vm576_vm1, %v479_v6 }
 0x16d   :  { %2486 = vmatmul.mubr.msk.bf16.gmra.mxu0 %vm576_vm1, %v480_v52 }
 0x16e   :  { %2489 = vmatprep.mubr.msk.bf16.mxu0 %vm576_vm1, %v489_v59 }
 0x175   :  { %2490 = vmatmul.mubr.msk.bf16.gmra.mxu0 %vm576_vm1, %v490_v55 }
 0x176   :  { %2493 = vmatprep.mubr.msk.bf16.mxu0 %vm576_vm1, %v491_v9  ;;  %v516_v9 = vld [vmem:[#allocation2 + $0x20] sm:$0xff] }
 0x17d   :  { %2494 = vmatmul.mubr.msk.bf16.gmra.mxu0 %vm576_vm1, %v492_v7 }
 0x17e   :  { %2497 = vmatprep.mubr.msk.bf16.mxu0 %vm576_vm1, %v493_v25 }
 0x185   :  { %2498 = vmatmul.mubr.msk.bf16.gmra.mxu0 %vm576_vm1, %v494_v22 }
 0x186   :  { %2501 = vmatprep.mubr.msk.bf16.mxu0 %vm576_vm1, %v495_v53 }
 0x18d   :  { %2502 = vmatmul.mubr.msk.bf16.gmra.mxu0 %vm576_vm1, %v496_v44 }
 0x18e   :  { %2505 = vmatprep.mubr.msk.bf16.mxu0 %vm576_vm1, %v504_v60 }
 0x195   :  { %2506 = vmatmul.mubr.msk.bf16.gmra.mxu0 %vm576_vm1, %v505_v56  ;;  %v515_v56 = vld [vmem:[#allocation2 + $0x18] sm:$0xff] }
 0x196   :  { %2509 = vmatprep.mubr.msk.bf16.mxu0 %vm576_vm1, %v506_v10 }
 0x19d   :  { %2510 = vmatmul.mubr.msk.bf16.gmra.mxu0 %vm576_vm1, %v507_v8 }
 0x19e   :  { %2513 = vmatprep.mubr.msk.bf16.mxu0 %vm576_vm1, %v508_v29  ;;  %v521_v29 = vld [vmem:[#allocation2 + $0x48] sm:$0xff] }
 0x1a5   :  { %2514 = vmatmul.mubr.msk.bf16.gmra.mxu0 %vm576_vm1, %v509_v23 }
 0x1a6   :  { %2517 = vmatprep.mubr.msk.bf16.mxu0 %vm576_vm1, %v510_v54  ;;  %v525_v54 = vld [vmem:[#allocation2 + $0x68] sm:$0xff] }
 0x1ad   :  { %2518 = vmatmul.mubr.msk.bf16.gmra.mxu0 %vm576_vm1, %v511_v48 }
 0x1f5   :  { %v2459_v45 = vpop.f32.mrf.mxu0 }
 0x1f6   :  { %v3293_v51 = vadd.f32 %v2459_v45, %v514_v26  ;;  %v534_v26 = vld [vmem:[#allocation2 + $0xb0] sm:$0xff] }
 0x1f7   :  { %v731_v55 = vpop.f32.mrf.mxu0 }
 0x1f8   :  { %v3295_v59 = vadd.f32 %v731_v55, %v512_v47  ;;  %990 = vmax.xlane.f32.xlu1 %v3293_v51  ;;  %v533_v47 = vld [vmem:[#allocation2 + $0xa8] sm:$0xff] }
 0x1f9   :  { %v2460_v60 = vpop.f32.mrf.mxu0 }
 0x1fa   :  { %v3298_v4 = vadd.f32 %v2460_v60, %v515_v56  ;;  %986 = vmax.xlane.f32.xlu0 %v3295_v59 }
 0x1fb   :  { %v734_v46 = vpop.f32.mrf.mxu0 }
 0x1fc   :  { %v3301_v7 = vadd.f32 %v734_v46, %v513_v1  ;;  %992 = vmax.xlane.f32.xlu1 %v3298_v4  ;;  %v535_v1 = vld [vmem:[#allocation2 + $0xb8] sm:$0xff] }
 0x1fd   :  { %v2463_v8 = vpop.f32.mrf.mxu0 }
 0x1fe   :  { %988 = vmax.xlane.f32.xlu0 %v3301_v7  ;;  %v3308_v16 = vadd.f32 %v2463_v8, %v518_v12  ;;  %v536_v8 = vld [vmem:[#allocation2 + $0xc0] sm:$0xff] }
 0x1ff   :  { %v747_v10 = vpop.f32.mrf.mxu0 }
 0x200   :  { %v3305_v11 = vadd.f32 %v747_v10, %v516_v9 }
 0x201   :  { %v2464_v13 = vpop.f32.mrf.mxu0 }
 0x202   :  { %994 = vmax.xlane.f32.xlu0 %v3305_v11  ;;  %v3314_v22 = vadd.f32 %v2464_v13, %v519_v18  ;;  %v538_v13 = vld [vmem:[#allocation2 + $0xd0] sm:$0xff] }
 0x203   :  { %v750_v15 = vpop.f32.mrf.mxu0 }
 0x204   :  { %v3310_v17 = vadd.f32 %v750_v15, %v517_v14  ;;  %v537_v15 = vld [vmem:[#allocation2 + $0xc8] sm:$0xff] }
 0x205   :  { %v2467_v19 = vpop.f32.mrf.mxu0 }
 0x206   :  { %996 = vmax.xlane.f32.xlu1 %v3310_v17  ;;  %998 = vmax.xlane.f32.xlu0 %v3308_v16  ;;  %v3320_v34 = vadd.f32 %v2467_v19, %v522_v24 }
 0x207   :  { %v763_v21 = vpop.f32.mrf.mxu0 }
 0x208   :  { %v3316_v23 = vadd.f32 %v763_v21, %v520_v20  ;;  %v539_v21 = vld [vmem:[#allocation2 + $0xd8] sm:$0xff] }
 0x209   :  { %v2468_v25 = vpop.f32.mrf.mxu0 }
 0x20a   :  { %1000 = vmax.xlane.f32.xlu1 %v3314_v22  ;;  %1002 = vmax.xlane.f32.xlu0 %v3316_v23  ;;  %v3326_v44 = vadd.f32 %v2468_v25, %v523_v37  ;;  %v540_v25 = vld [vmem:[#allocation2 + $0xe0] sm:$0xff] }
 0x20b   :  { %v766_v32 = vpop.f32.mrf.mxu0 }
 0x20c   :  { %v3322_v36 = vadd.f32 %v766_v32, %v521_v29 }
 0x20d   :  { %v2471_v38 = vpop.f32.mrf.mxu0 }
 0x20e   :  { %1004 = vmax.xlane.f32.xlu1 %v3322_v36  ;;  %1006 = vmax.xlane.f32.xlu0 %v3320_v34  ;;  %v3332_v61 = vadd.f32 %v2471_v38, %v526_v49  ;;  %v542_v38 = vld [vmem:[#allocation2 + $0xf0] sm:$0xff] }
 0x20f   :  { %v779_v41 = vpop.f32.mrf.mxu0 }
 0x210   :  { %v3328_v48 = vadd.f32 %v779_v41, %v524_v39  ;;  %v541_v41 = vld [vmem:[#allocation2 + $0xe8] sm:$0xff] }
 0x211   :  { %v2472_v53 = vpop.f32.mrf.mxu0 }
 0x212   :  { %1008 = vmax.xlane.f32.xlu1 %v3326_v44  ;;  %1010 = vmax.xlane.f32.xlu0 %v3328_v48  ;;  %v3338_v28 = vadd.f32 %v2472_v53, %v527_v40 }
 0x213   :  { %v782_v57 = vpop.f32.mrf.mxu0 }
 0x214   :  { %v3334_v33 = vadd.f32 %v782_v57, %v525_v54  ;;  %v543_v57 = vld [vmem:[#allocation2 + $0xf8] sm:$0xff] }
 0x215   :  { %v2475_v62 = vpop.f32.mrf.mxu0 }
 0x216   :  { %1012 = vmax.xlane.f32.xlu1 %v3334_v33  ;;  %1014 = vmax.xlane.f32.xlu0 %v3332_v61  ;;  %v3344_v2 = vadd.f32 %v2475_v62, %v530_v31  ;;  %v544_v62 = vld [vmem:[#allocation2 + $0x100] sm:$0xff] }
 0x217   :  { %v795_v27 = vpop.f32.mrf.mxu0 }
 0x218   :  { %v3340_v30 = vadd.f32 %v795_v27, %v528_v35 }
 0x219   :  { %v2476_v43 = vpop.f32.mrf.mxu0 }
 0x21a   :  { %1016 = vmax.xlane.f32.xlu1 %v3338_v28  ;;  %1018 = vmax.xlane.f32.xlu0 %v3340_v30  ;;  %v3350_v6 = vadd.f32 %v2476_v43, %v531_v3  ;;  %v546_v43 = vld [vmem:[#allocation2 + $0x110] sm:$0xff] }
 0x21b   :  { %v798_v0 = vpop.f32.mrf.mxu0 }
 0x21c   :  { %v3346_v50 = vadd.f32 %v798_v0, %v529_v63  ;;  %v545_v0 = vld [vmem:[#allocation2 + $0x108] sm:$0xff] }
 0x21d   :  { %v2479_v42 = vpop.f32.mrf.mxu0 }
 0x21e   :  { %1020 = vmax.xlane.f32.xlu1 %v3346_v50  ;;  %1022 = vmax.xlane.f32.xlu0 %v3344_v2  ;;  %v3356_v56 = vadd.f32 %v2479_v42, %v534_v26 }
 0x21f   :  { %v811_v58 = vpop.f32.mrf.mxu0 }
 0x220   :  { %v3352_v52 = vadd.f32 %v811_v58, %v532_v5  ;;  %v547_v58 = vld [vmem:[#allocation2 + $0x118] sm:$0xff] }
 0x221   :  { %v2480_v45 = vpop.f32.mrf.mxu0 }
 0x222   :  { %1024 = vmax.xlane.f32.xlu1 %v3350_v6  ;;  %1026 = vmax.xlane.f32.xlu0 %v3352_v52  ;;  %v3362_v10 = vadd.f32 %v2480_v45, %v535_v1  ;;  %v548_v45 = vld [vmem:[#allocation2 + $0x120] sm:$0xff] }
 0x223   :  { %v814_v55 = vpop.f32.mrf.mxu0 }
 0x224   :  { %v3358_v60 = vadd.f32 %v814_v55, %v533_v47 }
 0x225   :  { %v2483_v46 = vpop.f32.mrf.mxu0 }
 0x226   :  { %1028 = vmax.xlane.f32.xlu1 %v3358_v60  ;;  %1030 = vmax.xlane.f32.xlu0 %v3356_v56  ;;  %v3368_v19 = vadd.f32 %v2483_v46, %v538_v13  ;;  %v550_v46 = vld [vmem:[#allocation2 + $0x130] sm:$0xff] }
 0x227   :  { %v827_v9 = vpop.f32.mrf.mxu0 }
 0x228   :  { %v3364_v12 = vadd.f32 %v827_v9, %v536_v8  ;;  %v549_v9 = vld [vmem:[#allocation2 + $0x128] sm:$0xff] }
 0x229   :  { %v2484_v14 = vpop.f32.mrf.mxu0 }
 0x22a   :  { %1032 = vmax.xlane.f32.xlu1 %v3362_v10  ;;  %1034 = vmax.xlane.f32.xlu0 %v3364_v12  ;;  %v3374_v32 = vadd.f32 %v2484_v14, %v539_v21 }
 0x22b   :  { %v830_v18 = vpop.f32.mrf.mxu0 }
 0x22c   :  { %v3370_v20 = vadd.f32 %v830_v18, %v537_v15  ;;  %v551_v18 = vld [vmem:[#allocation2 + $0x138] sm:$0xff] }
 0x22d   :  { %v2487_v24 = vpop.f32.mrf.mxu0 }
 0x22e   :  { %1036 = vmax.xlane.f32.xlu1 %v3370_v20  ;;  %1038 = vmax.xlane.f32.xlu0 %v3368_v19  ;;  %v3380_v53 = vadd.f32 %v2487_v24, %v542_v38  ;;  %v552_v24 = vld [vmem:[#allocation2 + $0x140] sm:$0xff] }
 0x22f   :  { %v843_v29 = vpop.f32.mrf.mxu0 }
 0x230   :  { %v3376_v37 = vadd.f32 %v843_v29, %v540_v25 }
 0x231   :  { %v2488_v39 = vpop.f32.mrf.mxu0 }
 0x232   :  { %1040 = vmax.xlane.f32.xlu1 %v3374_v32  ;;  %1042 = vmax.xlane.f32.xlu0 %v3376_v37  ;;  %v3386_v27 = vadd.f32 %v2488_v39, %v543_v57  ;;  %v554_v39 = vld [vmem:[#allocation2 + $0x150] sm:$0xff] }
 0x233   :  { %v846_v49 = vpop.f32.mrf.mxu0 }
 0x234   :  { %v3382_v54 = vadd.f32 %v846_v49, %v541_v41  ;;  %v553_v49 = vld [vmem:[#allocation2 + $0x148] sm:$0xff] }
 0x235   :  { %v2491_v40 = vpop.f32.mrf.mxu0 }
 0x236   :  { %1044 = vmax.xlane.f32.xlu1 %v3382_v54  ;;  %1046 = vmax.xlane.f32.xlu0 %v3380_v53  ;;  %v3392_v42 = vadd.f32 %v2491_v40, %v546_v43 }
 0x237   :  { %v859_v35 = vpop.f32.mrf.mxu0 }
 0x238   :  { %v3388_v31 = vadd.f32 %v859_v35, %v544_v62  ;;  %v555_v35 = vld [vmem:[#allocation2 + $0x158] sm:$0xff] }
 0x239   :  { %v2492_v63 = vpop.f32.mrf.mxu0 }
 0x23a   :  { %1048 = vmax.xlane.f32.xlu1 %v3386_v27  ;;  %1050 = vmax.xlane.f32.xlu0 %v3388_v31  ;;  %v3398_v55 = vadd.f32 %v2492_v63, %v547_v58  ;;  %v556_v63 = vld [vmem:[#allocation2 + $0x160] sm:$0xff] }
 0x23b   :  { %v862_v3 = vpop.f32.mrf.mxu0 }
 0x23c   :  { %v3394_v5 = vadd.f32 %v862_v3, %v545_v0 }
 0x23d   :  { %v2495_v26 = vpop.f32.mrf.mxu0 }
 0x23e   :  { %1052 = vmax.xlane.f32.xlu1 %v3394_v5  ;;  %1054 = vmax.xlane.f32.xlu0 %v3392_v42  ;;  %v3404_v14 = vadd.f32 %v2495_v26, %v550_v46  ;;  %v558_v26 = vld [vmem:[#allocation2 + $0x170] sm:$0xff] }
 0x23f   :  { %v875_v47 = vpop.f32.mrf.mxu0 }
 0x240   :  { %v3400_v1 = vadd.f32 %v875_v47, %v548_v45  ;;  %v557_v47 = vld [vmem:[#allocation2 + $0x168] sm:$0xff] }
 0x241   :  { %v2496_v8 = vpop.f32.mrf.mxu0 }
 0x242   :  { %1056 = vmax.xlane.f32.xlu1 %v3398_v55  ;;  %1058 = vmax.xlane.f32.xlu0 %v3400_v1  ;;  %v3410_v29 = vadd.f32 %v2496_v8, %v551_v18 }
 0x243   :  { %v878_v13 = vpop.f32.mrf.mxu0 }
 0x244   :  { %v3406_v15 = vadd.f32 %v878_v13, %v549_v9  ;;  %v559_v13 = vld [vmem:[#allocation2 + $0x178] sm:$0xff] }
 0x245   :  { %v2499_v21 = vpop.f32.mrf.mxu0 }
 0x246   :  { %1060 = vmax.xlane.f32.xlu1 %v3406_v15  ;;  %1062 = vmax.xlane.f32.xlu0 %v3404_v14  ;;  %v3416_v40 = vadd.f32 %v2499_v21, %v554_v39  ;;  %v560_v21 = vld [vmem:[#allocation2 + $0x180] sm:$0xff] }
 0x247   :  { %v891_v25 = vpop.f32.mrf.mxu0 }
 0x248   :  { %v3412_v38 = vadd.f32 %v891_v25, %v552_v24 }
 0x249   :  { %v2500_v41 = vpop.f32.mrf.mxu0 }
 0x24a   :  { %1064 = vmax.xlane.f32.xlu1 %v3410_v29  ;;  %1066 = vmax.xlane.f32.xlu0 %v3412_v38  ;;  %v3422_v3 = vadd.f32 %v2500_v41, %v555_v35  ;;  %v562_v41 = vld [vmem:[#allocation2 + $0x190] sm:$0xff] }
 0x24b   :  { %v894_v57 = vpop.f32.mrf.mxu0 }
 0x24c   :  { %v3418_v62 = vadd.f32 %v894_v57, %v553_v49  ;;  %v561_v57 = vld [vmem:[#allocation2 + $0x188] sm:$0xff] }
 0x24d   :  { %v2503_v43 = vpop.f32.mrf.mxu0 }
 0x24e   :  { %1068 = vmax.xlane.f32.xlu1 %v3418_v62  ;;  %1070 = vmax.xlane.f32.xlu0 %v3416_v40  ;;  %v3428_v8 = vadd.f32 %v2503_v43, %v558_v26 }
 0x24f   :  { %v907_v0 = vpop.f32.mrf.mxu0 }
 0x250   :  { %v3424_v58 = vadd.f32 %v907_v0, %v556_v63  ;;  %v563_v0 = vld [vmem:[#allocation2 + $0x198] sm:$0xff] }
 0x251   :  { %v2504_v45 = vpop.f32.mrf.mxu0 }
 0x252   :  { %1072 = vmax.xlane.f32.xlu1 %v3422_v3  ;;  %1074 = vmax.xlane.f32.xlu0 %v3424_v58  ;;  %v3434_v25 = vadd.f32 %v2504_v45, %v559_v13 }
 0x253   :  { %v910_v46 = vpop.f32.mrf.mxu0 }
 0x254   :  { %v3430_v9 = vadd.f32 %v910_v46, %v557_v47  ;;  %v564_v47 = vld [vmem:[#allocation2 + $0x1a0] sm:$0xff] }
 0x255   :  { %v2507_v18 = vpop.f32.mrf.mxu0 }
 0x256   :  { %1076 = vmax.xlane.f32.xlu1 %v3430_v9  ;;  %1078 = vmax.xlane.f32.xlu0 %v3428_v8  ;;  %v3440_v43 = vadd.f32 %v2507_v18, %v562_v41 }
 0x257   :  { %v923_v24 = vpop.f32.mrf.mxu0 }
 0x258   :  { %v3436_v39 = vadd.f32 %v923_v24, %v560_v21  ;;  %3999 = vst [vmem:[#allocation6_spill] sm:$0xff] %v3440_v43  ;;  %v566_v21 = vld [vmem:[#allocation2 + $0x1b0] sm:$0xff] }
 0x259   :  { %v2508_v49 = vpop.f32.mrf.mxu0 }
 0x25a   :  { %3998 = vst [vmem:[#allocation5_spill] sm:$0xff] %v3436_v39  ;;  %1080 = vmax.xlane.f32.xlu1 %v3434_v25  ;;  %1082 = vmax.xlane.f32.xlu0 %v3436_v39  ;;  %v3446_v46 = vadd.f32 %v2508_v49, %v563_v0  ;;  %v565_v39 = vld [vmem:[#allocation2 + $0x1a8] sm:$0xff] }
 0x25b   :  { %v926_v35 = vpop.f32.mrf.mxu0 }
 0x25c   :  { %v3442_v63 = vadd.f32 %v926_v35, %v561_v57  ;;  %4001 = vst [vmem:[#allocation8_spill] sm:$0xff] %v3446_v46  ;;  %v567_v35 = vld [vmem:[#allocation2 + $0x1b8] sm:$0xff] }
 0x25d   :  { %v2511_v26 = vpop.f32.mrf.mxu0 }
 0x25e   :  { %4000 = vst [vmem:[#allocation7_spill] sm:$0xff] %v3442_v63  ;;  %1084 = vmax.xlane.f32.xlu1 %v3442_v63  ;;  %1086 = vmax.xlane.f32.xlu0 %v3440_v43  ;;  %v3452_v41 = vadd.f32 %v2511_v26, %v566_v21  ;;  %v568_v43 = vld [vmem:[#allocation2 + $0x1c0] sm:$0xff] }
 0x25f   :  { %v939_v45 = vpop.f32.mrf.mxu0 }
 0x260   :  { %v3448_v13 = vadd.f32 %v939_v45, %v564_v47  ;;  %4003 = vst [vmem:[#allocation10_spill] sm:$0xff] %v3452_v41  ;;  %v570_v45 = vld [vmem:[#allocation2 + $0x1d0] sm:$0xff] }
 0x261   :  { %v2512_v24 = vpop.f32.mrf.mxu0 }
 0x262   :  { %4002 = vst [vmem:[#allocation9_spill] sm:$0xff] %v3448_v13  ;;  %1088 = vmax.xlane.f32.xlu1 %v3446_v46  ;;  %1090 = vmax.xlane.f32.xlu0 %v3448_v13  ;;  %v3458_v0 = vadd.f32 %v2512_v24, %v567_v35  ;;  %v569_v13 = vld [vmem:[#allocation2 + $0x1c8] sm:$0xff] }
 0x263   :  { %v942_v18 = vpop.f32.mrf.mxu0 }
 0x264   :  { %v3454_v57 = vadd.f32 %v942_v18, %v565_v39  ;;  %4005 = vst [vmem:[#allocation12_spill] sm:$0xff] %v3458_v0  ;;  %v571_v18 = vld [vmem:[#allocation2 + $0x1d8] sm:$0xff] }
 0x265   :  { %v2515_v63 = vpop.f32.mrf.mxu0 }
 0x266   :  { %4004 = vst [vmem:[#allocation11_spill] sm:$0xff] %v3454_v57  ;;  %1092 = vmax.xlane.f32.xlu1 %v3454_v57  ;;  %1094 = vmax.xlane.f32.xlu0 %v3452_v41  ;;  %v3464_v26 = vadd.f32 %v2515_v63, %v570_v45  ;;  %v572_v41 = vld [vmem:[#allocation2 + $0x1e0] sm:$0xff] }
 0x267   :  { %v955_v49 = vpop.f32.mrf.mxu0 }
 0x268   :  { %v3460_v47 = vadd.f32 %v955_v49, %v568_v43  ;;  %v574_v49 = vld [vmem:[#allocation2 + $0x1f0] sm:$0xff] }
 0x269   :  { %v2516_v46 = vpop.f32.mrf.mxu0 }
 0x26a   :  { %4006 = vst [vmem:[#allocation13_spill] sm:$0xff] %v3460_v47  ;;  %1096 = vmax.xlane.f32.xlu1 %v3458_v0  ;;  %1098 = vmax.xlane.f32.xlu0 %v3460_v47  ;;  %v3470_v24 = vadd.f32 %v2516_v46, %v571_v18  ;;  %v573_v47 = vld [vmem:[#allocation2 + $0x1e8] sm:$0xff] }
 0x26b   :  { %v958_v39 = vpop.f32.mrf.mxu0 }
 0x26c   :  { %v3466_v21 = vadd.f32 %v958_v39, %v569_v13  ;;  %4007 = vst [vmem:[#allocation14_spill] sm:$0xff] %v3470_v24  ;;  %v575_v39 = vld [vmem:[#allocation2 + $0x1f8] sm:$0xff] }
 0x26d   :  { %v2519_v57 = vpop.f32.mrf.mxu0 }
 0x26e   :  { %1100 = vmax.xlane.f32.xlu1 %v3466_v21  ;;  %1102 = vmax.xlane.f32.xlu0 %v3464_v26  ;;  %v3476_v13 = vadd.f32 %v2519_v57, %v574_v49 }
 0x26f   :  { %v971_v43 = vpop.f32.mrf.mxu0 }
 0x270   :  { %v3472_v35 = vadd.f32 %v971_v43, %v572_v41  ;;  %4009 = vst [vmem:[#allocation16_spill] sm:$0xff] %v3476_v13 }
 0x271   :  { %v2520_v0 = vpop.f32.mrf.mxu0 }
 0x272   :  { %4008 = vst [vmem:[#allocation15_spill] sm:$0xff] %v3472_v35  ;;  %1104 = vmax.xlane.f32.xlu1 %v3470_v24  ;;  %1106 = vmax.xlane.f32.xlu0 %v3472_v35  ;;  %v3482_v46 = vadd.f32 %v2520_v0, %v575_v39 }
 0x273   :  { %v974_v63 = vpop.f32.mrf.mxu0 }
 0x274   :  { %v3478_v45 = vadd.f32 %v974_v63, %v573_v47  ;;  %4011 = vst [vmem:[#allocation18_spill] sm:$0xff] %v3482_v46 }
 0x276   :  { %4010 = vst [vmem:[#allocation17_spill] sm:$0xff] %v3478_v45  ;;  %1108 = vmax.xlane.f32.xlu1 %v3478_v45  ;;  %1110 = vmax.xlane.f32.xlu0 %v3476_v13 }
 0x27a   :  { %1112 = vmax.xlane.f32.xlu1 %v3482_v46 }
 0x281   :  { %v991_v41 = vpop.xlane.xlu1 %990 }
 0x282   :  { %v1116_v18 = vsub.f32 %v3293_v51, %v991_v41 }
 0x283   :  { %v987_v43 = vpop.xlane.xlu0 %986 }
 0x284   :  { %v1182_v24 = vmul.f32 1.442695, %v1116_v18  ;;  %v1114_v35 = vsub.f32 %v3295_v59, %v987_v43 }
 0x285   :  { %v993_v57 = vpop.xlane.xlu1 %992 }
 0x286   :  { %2660 = vpow2.f32 %v1182_v24  ;;  %v1178_v47 = vmul.f32 1.442695, %v1114_v35  ;;  %v1117_v49 = vsub.f32 %v3298_v4, %v993_v57 }
 0x287   :  { %v989_v63 = vpop.xlane.xlu0 %988 }
 0x288   :  { %v1184_v45 = vmul.f32 1.442695, %v1117_v49  ;;  %v1115_v13 = vsub.f32 %v3301_v7, %v989_v63  ;;  %2662 = vpow2.f32 %v1178_v47 }
 0x28a   :  { %2664 = vpow2.f32 %v1184_v45  ;;  %v1180_v0 = vmul.f32 1.442695, %v1115_v13 }
 0x28b   :  { %v995_v39 = vpop.xlane.xlu0 %994 }
 0x28c   :  { %2666 = vpow2.f32 %v1180_v0  ;;  %v1118_v51 = vsub.f32 %v3305_v11, %v995_v39 }
 0x28e   :  { %v1186_v41 = vmul.f32 1.442695, %v1118_v51 }
 0x28f   :  { %v997_v18 = vpop.xlane.xlu1 %996  ;;  %v999_v46 = vpop.xlane.xlu0 %998 }
 0x290   :  { %v1119_v59 = vsub.f32 %v3310_v17, %v997_v18  ;;  %v1120_v24 = vsub.f32 %v3308_v16, %v999_v46  ;;  %2668 = vpow2.f32 %v1186_v41 }
 0x292   :  { %v1188_v35 = vmul.f32 1.442695, %v1119_v59  ;;  %v1190_v4 = vmul.f32 1.442695, %v1120_v24 }
 0x293   :  { %v2661_v43 = vpop.eup %2660  ;;  %v1001_v57 = vpop.xlane.xlu1 %1000 }
 0x294   :  { %v1003_v7 = vpop.xlane.xlu0 %1002  ;;  %2670 = vpow2.f32 %v1188_v35  ;;  %v1121_v13 = vsub.f32 %v3314_v22, %v1001_v57  ;;  %1310 = vadd.xlane.f32.xlu0 %v2661_v43 }
 0x295   :  { %v1122_v45 = vsub.f32 %v3316_v23, %v1003_v7  ;;  %2672 = vpow2.f32 %v1190_v4  ;;  %v2663_v11 = vpop.eup %2662 }
 0x296   :  { %v1192_v47 = vmul.f32 1.442695, %v1121_v13 }
 0x297   :  { %v2665_v49 = vpop.eup %2664  ;;  %v1194_v63 = vmul.f32 1.442695, %v1122_v45  ;;  %v1005_v17 = vpop.xlane.xlu1 %1004 }
 0x298   :  { %v1007_v0 = vpop.xlane.xlu0 %1006  ;;  %2674 = vpow2.f32 %v1192_v47  ;;  %v1123_v16 = vsub.f32 %v3322_v36, %v1005_v17  ;;  %1312 = vadd.xlane.f32.xlu1 %v2665_v49  ;;  %1306 = vadd.xlane.f32.xlu0 %v2663_v11  ;;  %v1499_v59 = vpack.c.bf16 %v2665_v49, %v2661_v43 }
 0x299   :  { %v1124_v46 = vsub.f32 %v3320_v34, %v1007_v0  ;;  %v2667_v39 = vpop.eup %2666  ;;  %2676 = vpow2.f32 %v1194_v63 }
 0x29a   :  { %v1196_v51 = vmul.f32 1.442695, %v1123_v16  ;;  %v1498_v41 = vpack.c.bf16 %v2667_v39, %v2663_v11 }
 0x29b   :  { %v1198_v22 = vmul.f32 1.442695, %v1124_v46  ;;  %v1009_v23 = vpop.xlane.xlu1 %1008 }
 0x29c   :  { %v1011_v18 = vpop.xlane.xlu0 %1010  ;;  %2678 = vpow2.f32 %v1196_v51  ;;  %v1125_v24 = vsub.f32 %v3326_v44, %v1009_v23  ;;  %2537 = vmatprep.mubr.bf16.mxu1 %v1498_v41  ;;  %1308 = vadd.xlane.f32.xlu1 %v2667_v39 }
 0x29d   :  { %v1126_v35 = vsub.f32 %v3328_v48, %v1011_v18  ;;  %2680 = vpow2.f32 %v1198_v22  ;;  %2538 = vmatmul.mubr.bf16.vlgmr.msra.gmra.mxu1 %v1499_v59  ;;  %v2669_v7 = vpop.eup %2668 }
 0x29e   :  { %v1200_v34 = vmul.f32 1.442695, %v1125_v24 }
 0x29f   :  { %v1202_v36 = vmul.f32 1.442695, %v1126_v35  ;;  %v1013_v4 = vpop.xlane.xlu1 %1012 }
 0x2a0   :  { %v1015_v57 = vpop.xlane.xlu0 %1014  ;;  %2682 = vpow2.f32 %v1200_v34  ;;  %v1127_v13 = vsub.f32 %v3334_v33, %v1013_v4 }
 0x2a1   :  { %v1128_v45 = vsub.f32 %v3332_v61, %v1015_v57  ;;  %v2671_v43 = vpop.eup %2670  ;;  %2684 = vpow2.f32 %v1202_v36 }
 0x2a2   :  { %v2673_v11 = vpop.eup %2672  ;;  %v1204_v47 = vmul.f32 1.442695, %v1127_v13  ;;  %v1500_v49 = vpack.c.bf16 %v2671_v43, %v2669_v7 }
 0x2a3   :  { %v1206_v44 = vmul.f32 1.442695, %v1128_v45  ;;  %1318 = vadd.xlane.f32.xlu0 %v2673_v11  ;;  %v1017_v48 = vpop.xlane.xlu1 %1016 }
 0x2a4   :  { %v1019_v63 = vpop.xlane.xlu0 %1018  ;;  %2686 = vpow2.f32 %v1204_v47  ;;  %v1129_v17 = vsub.f32 %v3338_v28, %v1017_v48  ;;  %2541 = vmatprep.mubr.bf16.mxu1 %v1500_v49 }
 0x2a5   :  { %v1130_v0 = vsub.f32 %v3340_v30, %v1019_v63  ;;  %v2675_v16 = vpop.eup %2674  ;;  %2688 = vpow2.f32 %v1206_v44 }
 0x2a6   :  { %v1208_v33 = vmul.f32 1.442695, %v1129_v17  ;;  %1320 = vadd.xlane.f32.xlu1 %v2675_v16  ;;  %v1501_v61 = vpack.c.bf16 %v2675_v16, %v2673_v11  ;;  %v2677_v22 = vpop.eup %2676 }
 0x2a7   :  { %v1210_v46 = vmul.f32 1.442695, %v1130_v0  ;;  %1314 = vadd.xlane.f32.xlu0 %v2669_v7  ;;  %v1021_v39 = vpop.xlane.xlu1 %1020 }
 0x2a8   :  { %v1023_v51 = vpop.xlane.xlu0 %1022  ;;  %2690 = vpow2.f32 %v1208_v33  ;;  %v1131_v41 = vsub.f32 %v3346_v50, %v1021_v39  ;;  %2542 = vmatmul.mubr.bf16.gmra.mxu1 %v1501_v61 }
 0x2a9   :  { %v1132_v23 = vsub.f32 %v3344_v2, %v1023_v51  ;;  %v2679_v28 = vpop.eup %2678  ;;  %2692 = vpow2.f32 %v1210_v46 }
 0x2aa   :  { %v2681_v18 = vpop.eup %2680  ;;  %v1212_v30 = vmul.f32 1.442695, %v1131_v41  ;;  %1316 = vadd.xlane.f32.xlu1 %v2671_v43  ;;  %v1502_v24 = vpack.c.bf16 %v2679_v28, %v2677_v22 }
 0x2ab   :  { %v1214_v59 = vmul.f32 1.442695, %v1132_v23  ;;  %1326 = vadd.xlane.f32.xlu0 %v2681_v18  ;;  %v1025_v35 = vpop.xlane.xlu1 %1024 }
 0x2ac   :  { %v1027_v34 = vpop.xlane.xlu0 %1026  ;;  %2694 = vpow2.f32 %v1212_v30  ;;  %v1133_v36 = vsub.f32 %v3350_v6, %v1025_v35  ;;  %2545 = vmatprep.mubr.bf16.mxu1 %v1502_v24 }
 0x2ad   :  { %v1134_v4 = vsub.f32 %v3352_v52, %v1027_v34  ;;  %v2683_v50 = vpop.eup %2682  ;;  %2696 = vpow2.f32 %v1214_v59 }
 0x2ae   :  { %v1216_v2 = vmul.f32 1.442695, %v1133_v36  ;;  %1328 = vadd.xlane.f32.xlu1 %v2683_v50  ;;  %v1503_v57 = vpack.c.bf16 %v2683_v50, %v2681_v18  ;;  %v2685_v43 = vpop.eup %2684 }
 0x2af   :  { %v1218_v7 = vmul.f32 1.442695, %v1134_v4  ;;  %1322 = vadd.xlane.f32.xlu0 %v2677_v22  ;;  %v1029_v13 = vpop.xlane.xlu1 %1028 }
 0x2b0   :  { %v1031_v45 = vpop.xlane.xlu0 %1030  ;;  %2698 = vpow2.f32 %v1216_v2  ;;  %v1135_v11 = vsub.f32 %v3358_v60, %v1029_v13  ;;  %2546 = vmatmul.mubr.bf16.gmra.mxu1 %v1503_v57 }
 0x2b1   :  { %v1136_v47 = vsub.f32 %v3356_v56, %v1031_v45  ;;  %v2687_v6 = vpop.eup %2686  ;;  %2700 = vpow2.f32 %v1218_v7 }
 0x2b2   :  { %v2689_v44 = vpop.eup %2688  ;;  %v1220_v52 = vmul.f32 1.442695, %v1135_v11  ;;  %1324 = vadd.xlane.f32.xlu1 %v2679_v28  ;;  %v1504_v48 = vpack.c.bf16 %v2687_v6, %v2685_v43 }
 0x2b3   :  { %v1222_v49 = vmul.f32 1.442695, %v1136_v47  ;;  %1334 = vadd.xlane.f32.xlu0 %v2689_v44  ;;  %v1033_v63 = vpop.xlane.xlu1 %1032 }
 0x2b4   :  { %v1035_v17 = vpop.xlane.xlu0 %1034  ;;  %2702 = vpow2.f32 %v1220_v52  ;;  %v1137_v0 = vsub.f32 %v3362_v10, %v1033_v63  ;;  %2549 = vmatprep.mubr.bf16.mxu1 %v1504_v48 }
 0x2b5   :  { %v1138_v16 = vsub.f32 %v3364_v12, %v1035_v17  ;;  %v2691_v60 = vpop.eup %2690  ;;  %2704 = vpow2.f32 %v1222_v49 }
 0x2b6   :  { %v1224_v56 = vmul.f32 1.442695, %v1137_v0  ;;  %1336 = vadd.xlane.f32.xlu1 %v2691_v60  ;;  %v1505_v33 = vpack.c.bf16 %v2691_v60, %v2689_v44  ;;  %v2693_v51 = vpop.eup %2692 }
 0x2b7   :  { %v1226_v61 = vmul.f32 1.442695, %v1138_v16  ;;  %1330 = vadd.xlane.f32.xlu0 %v2685_v43  ;;  %v1037_v46 = vpop.xlane.xlu1 %1036 }
 0x2b8   :  { %v1039_v39 = vpop.xlane.xlu0 %1038  ;;  %2706 = vpow2.f32 %v1224_v56  ;;  %v1139_v22 = vsub.f32 %v3370_v20, %v1037_v46  ;;  %2550 = vmatmul.mubr.bf16.gmra.mxu1 %v1505_v33 }
 0x2b9   :  { %v1140_v41 = vsub.f32 %v3368_v19, %v1039_v39  ;;  %v2695_v10 = vpop.eup %2694  ;;  %2708 = vpow2.f32 %v1226_v61 }
 0x2ba   :  { %v2697_v23 = vpop.eup %2696  ;;  %v1228_v12 = vmul.f32 1.442695, %v1139_v22  ;;  %1332 = vadd.xlane.f32.xlu1 %v2687_v6  ;;  %v1506_v18 = vpack.c.bf16 %v2695_v10, %v2693_v51 }
 0x2bb   :  { %v1230_v28 = vmul.f32 1.442695, %v1140_v41  ;;  %1342 = vadd.xlane.f32.xlu0 %v2697_v23  ;;  %v1041_v30 = vpop.xlane.xlu1 %1040 }
 0x2bc   :  { %v1043_v59 = vpop.xlane.xlu0 %1042  ;;  %2710 = vpow2.f32 %v1228_v12  ;;  %v1141_v24 = vsub.f32 %v3374_v32, %v1041_v30  ;;  %2553 = vmatprep.mubr.bf16.mxu1 %v1506_v18 }
 0x2bd   :  { %v1142_v35 = vsub.f32 %v3376_v37, %v1043_v59  ;;  %v2699_v20 = vpop.eup %2698  ;;  %2712 = vpow2.f32 %v1230_v28 }
 0x2be   :  { %v1232_v19 = vmul.f32 1.442695, %v1141_v24  ;;  %1344 = vadd.xlane.f32.xlu1 %v2699_v20  ;;  %v1507_v34 = vpack.c.bf16 %v2699_v20, %v2697_v23  ;;  %v2701_v2 = vpop.eup %2700 }
 0x2bf   :  { %v1234_v36 = vmul.f32 1.442695, %v1142_v35  ;;  %1338 = vadd.xlane.f32.xlu0 %v2693_v51  ;;  %v1045_v4 = vpop.xlane.xlu1 %1044 }
 0x2c0   :  { %v1047_v50 = vpop.xlane.xlu0 %1046  ;;  %2714 = vpow2.f32 %v1232_v19  ;;  %v1143_v57 = vsub.f32 %v3382_v54, %v1045_v4  ;;  %2554 = vmatmul.mubr.bf16.gmra.mxu1 %v1507_v34 }
 0x2c1   :  { %v1144_v7 = vsub.f32 %v3380_v53, %v1047_v50  ;;  %v2703_v32 = vpop.eup %2702  ;;  %2716 = vpow2.f32 %v1234_v36 }
 0x2c2   :  { %v2705_v13 = vpop.eup %2704  ;;  %v1236_v37 = vmul.f32 1.442695, %v1143_v57  ;;  %1340 = vadd.xlane.f32.xlu1 %v2695_v10  ;;  %v1508_v43 = vpack.c.bf16 %v2703_v32, %v2701_v2 }
 0x2c3   :  { %v1238_v45 = vmul.f32 1.442695, %v1144_v7  ;;  %1350 = vadd.xlane.f32.xlu0 %v2705_v13  ;;  %v1049_v11 = vpop.xlane.xlu1 %1048 }
 0x2c4   :  { %v1051_v47 = vpop.xlane.xlu0 %1050  ;;  %2718 = vpow2.f32 %v1236_v37  ;;  %v1145_v6 = vsub.f32 %v3386_v27, %v1049_v11  ;;  %2557 = vmatprep.mubr.bf16.mxu1 %v1508_v43 }
 0x2c5   :  { %v1146_v44 = vsub.f32 %v3388_v31, %v1051_v47  ;;  %v2707_v54 = vpop.eup %2706  ;;  %2720 = vpow2.f32 %v1238_v45 }
 0x2c6   :  { %v1240_v53 = vmul.f32 1.442695, %v1145_v6  ;;  %1352 = vadd.xlane.f32.xlu1 %v2707_v54  ;;  %v1509_v52 = vpack.c.bf16 %v2707_v54, %v2705_v13  ;;  %v2709_v17 = vpop.eup %2708 }
 0x2c7   :  { %v1242_v49 = vmul.f32 1.442695, %v1146_v44  ;;  %1346 = vadd.xlane.f32.xlu0 %v2701_v2  ;;  %v1053_v48 = vpop.xlane.xlu1 %1052 }
 0x2c8   :  { %v1055_v63 = vpop.xlane.xlu0 %1054  ;;  %2722 = vpow2.f32 %v1240_v53  ;;  %v1147_v0 = vsub.f32 %v3394_v5, %v1053_v48  ;;  %2558 = vmatmul.mubr.bf16.gmra.mxu1 %v1509_v52 }
 0x2c9   :  { %v1148_v16 = vsub.f32 %v3392_v42, %v1055_v63  ;;  %v2711_v27 = vpop.eup %2710  ;;  %2724 = vpow2.f32 %v1242_v49  ;;  %v2656_v42 = vld [vmem:[%s3978_s4 + $0x18] sm:$0xff]  }
 0x2ca   :  { %v2713_v60 = vpop.eup %2712  ;;  %v1244_v31 = vmul.f32 1.442695, %v1147_v0  ;;  %1348 = vadd.xlane.f32.xlu1 %v2703_v32  ;;  %v1510_v33 = vpack.c.bf16 %v2711_v27, %v2709_v17  ;;  %2601 = vmatprep.subr.bf16.mxu1 %v2656_v42 }
 0x2cb   :  { %v1246_v56 = vmul.f32 1.442695, %v1148_v16  ;;  %1358 = vadd.xlane.f32.xlu0 %v2713_v60  ;;  %v1057_v61 = vpop.xlane.xlu1 %1056  ;;  %2602 = vmatpush3.bf16.msra.mxu1 %v2656_v42 }
 0x2cc   :  { %v1059_v46 = vpop.xlane.xlu0 %1058  ;;  %2726 = vpow2.f32 %v1244_v31  ;;  %v1149_v39 = vsub.f32 %v3398_v55, %v1057_v61  ;;  %2561 = vmatprep.mubr.bf16.mxu1 %v1510_v33  ;;  %v4012_v33 = vld [vmem:[#allocation5_spill] sm:$0xff] }
 0x2cd   :  { %v1150_v51 = vsub.f32 %v3400_v1, %v1059_v46  ;;  %v2715_v5 = vpop.eup %2714  ;;  %2728 = vpow2.f32 %v1246_v56 }
 0x2ce   :  { %v1248_v22 = vmul.f32 1.442695, %v1149_v39  ;;  %1360 = vadd.xlane.f32.xlu1 %v2715_v5  ;;  %v1511_v41 = vpack.c.bf16 %v2715_v5, %v2713_v60  ;;  %v2717_v28 = vpop.eup %2716 }
 0x2cf   :  { %v1250_v10 = vmul.f32 1.442695, %v1150_v51  ;;  %1354 = vadd.xlane.f32.xlu0 %v2709_v17  ;;  %v1061_v23 = vpop.xlane.xlu1 %1060 }
 0x2d0   :  { %v1063_v12 = vpop.xlane.xlu0 %1062  ;;  %2730 = vpow2.f32 %v1248_v22  ;;  %v1151_v55 = vsub.f32 %v3406_v15, %v1061_v23  ;;  %2562 = vmatmul.mubr.bf16.gmra.mxu1 %v1511_v41  ;;  %v4013_v22 = vld [vmem:[#allocation7_spill] sm:$0xff] }
 0x2d1   :  { %v1152_v1 = vsub.f32 %v3404_v14, %v1063_v12  ;;  %v2719_v18 = vpop.eup %2718  ;;  %2732 = vpow2.f32 %v1250_v10  ;;  %v4014_v10 = vld [vmem:[#allocation6_spill] sm:$0xff] }
 0x2d2   :  { %v2721_v30 = vpop.eup %2720  ;;  %v1252_v59 = vmul.f32 1.442695, %v1151_v55  ;;  %1356 = vadd.xlane.f32.xlu1 %v2711_v27  ;;  %v1512_v35 = vpack.c.bf16 %v2719_v18, %v2717_v28 }
 0x2d3   :  { %v1254_v24 = vmul.f32 1.442695, %v1152_v1  ;;  %1366 = vadd.xlane.f32.xlu0 %v2721_v30  ;;  %v1065_v20 = vpop.xlane.xlu1 %1064 }
 0x2d4   :  { %v1067_v19 = vpop.xlane.xlu0 %1066  ;;  %2734 = vpow2.f32 %v1252_v59  ;;  %v1153_v34 = vsub.f32 %v3410_v29, %v1065_v20  ;;  %2565 = vmatprep.mubr.bf16.mxu1 %v1512_v35  ;;  %v4015_v59 = vld [vmem:[#allocation8_spill] sm:$0xff]  ;;  %v4016_v35 = vld [vmem:[#allocation9_spill] sm:$0xff] }
 0x2d5   :  { %v1154_v36 = vsub.f32 %v3412_v38, %v1067_v19  ;;  %v2723_v15 = vpop.eup %2722  ;;  %2736 = vpow2.f32 %v1254_v24 }
 0x2d6   :  { %v1256_v14 = vmul.f32 1.442695, %v1153_v34  ;;  %1368 = vadd.xlane.f32.xlu1 %v2723_v15  ;;  %v1513_v4 = vpack.c.bf16 %v2723_v15, %v2721_v30  ;;  %v2725_v7 = vpop.eup %2724 }
 0x2d7   :  { %v1258_v50 = vmul.f32 1.442695, %v1154_v36  ;;  %1362 = vadd.xlane.f32.xlu0 %v2717_v28  ;;  %v1069_v2 = vpop.xlane.xlu1 %1068 }
 0x2d8   :  { %v1071_v57 = vpop.xlane.xlu0 %1070  ;;  %2738 = vpow2.f32 %v1256_v14  ;;  %v1155_v32 = vsub.f32 %v3418_v62, %v1069_v2  ;;  %2566 = vmatmul.mubr.bf16.gmra.mxu1 %v1513_v4  ;;  %v4017_v2 = vld [vmem:[#allocation11_spill] sm:$0xff] }
 0x2d9   :  { %v1156_v13 = vsub.f32 %v3416_v40, %v1071_v57  ;;  %v2727_v29 = vpop.eup %2726  ;;  %2740 = vpow2.f32 %v1258_v50 }
 0x2da   :  { %v2729_v37 = vpop.eup %2728  ;;  %v1260_v38 = vmul.f32 1.442695, %v1155_v32  ;;  %1364 = vadd.xlane.f32.xlu1 %v2719_v18  ;;  %v1514_v43 = vpack.c.bf16 %v2727_v29, %v2725_v7 }
 0x2db   :  { %v1262_v45 = vmul.f32 1.442695, %v1156_v13  ;;  %1374 = vadd.xlane.f32.xlu0 %v2729_v37  ;;  %v1073_v11 = vpop.xlane.xlu1 %1072 }
 0x2dc   :  { %v1075_v47 = vpop.xlane.xlu0 %1074  ;;  %2742 = vpow2.f32 %v1260_v38  ;;  %v1157_v6 = vsub.f32 %v3422_v3, %v1073_v11  ;;  %2569 = vmatprep.mubr.bf16.mxu1 %v1514_v43 }
 0x2dd   :  { %v1158_v44 = vsub.f32 %v3424_v58, %v1075_v47  ;;  %v2731_v62 = vpop.eup %2730  ;;  %2744 = vpow2.f32 %v1262_v45 }
 0x2de   :  { %v1264_v40 = vmul.f32 1.442695, %v1157_v6  ;;  %1376 = vadd.xlane.f32.xlu1 %v2731_v62  ;;  %v1515_v54 = vpack.c.bf16 %v2731_v62, %v2729_v37  ;;  %v2733_v48 = vpop.eup %2732  ;;  %v4019_v6 = vld [vmem:[#allocation12_spill] sm:$0xff]  ;;  %v4020_v62 = vld [vmem:[#allocation13_spill] sm:$0xff] }
 0x2df   :  { %v1266_v53 = vmul.f32 1.442695, %v1158_v44  ;;  %1370 = vadd.xlane.f32.xlu0 %v2725_v7  ;;  %v1077_v52 = vpop.xlane.xlu1 %1076  ;;  %v4018_v7 = vld [vmem:[#allocation10_spill] sm:$0xff] }
 0x2e0   :  { %v1079_v49 = vpop.xlane.xlu0 %1078  ;;  %2746 = vpow2.f32 %v1264_v40  ;;  %v1159_v63 = vsub.f32 %v3430_v9, %v1077_v52  ;;  %2570 = vmatmul.mubr.bf16.gmra.mxu1 %v1515_v54 }
 0x2e1   :  { %v1160_v17 = vsub.f32 %v3428_v8, %v1079_v49  ;;  %v2735_v3 = vpop.eup %2734  ;;  %2748 = vpow2.f32 %v1266_v53 }
 0x2e2   :  { %v2737_v0 = vpop.eup %2736  ;;  %v1268_v58 = vmul.f32 1.442695, %v1159_v63  ;;  %1372 = vadd.xlane.f32.xlu1 %v2727_v29  ;;  %v1516_v16 = vpack.c.bf16 %v2735_v3, %v2733_v48  ;;  %v2657_v29 = vld [vmem:[%s3978_s4 + $0x10] sm:$0xff]  }
 0x2e3   :  { %v1270_v27 = vmul.f32 1.442695, %v1160_v17  ;;  %1382 = vadd.xlane.f32.xlu0 %v2737_v0  ;;  %v1081_v60 = vpop.xlane.xlu1 %1080  ;;  %2603 = vmatprep.subr.bf16.mxu1 %v2657_v29 }
 0x2e4   :  { %v1083_v31 = vpop.xlane.xlu0 %1082  ;;  %2750 = vpow2.f32 %v1268_v58  ;;  %v1161_v56 = vsub.f32 %v3434_v25, %v1081_v60  ;;  %2573 = vmatprep.mubr.bf16.mxu1 %v1516_v16  ;;  %2604 = vmatpush3.bf16.msra.mxu1 %v2657_v29 }
 0x2e5   :  { %v1162_v61 = vsub.f32 %v4012_v33, %v1083_v31  ;;  %v2739_v9 = vpop.eup %2738  ;;  %2752 = vpow2.f32 %v1270_v27 }
 0x2e6   :  { %v1272_v46 = vmul.f32 1.442695, %v1161_v56  ;;  %1384 = vadd.xlane.f32.xlu1 %v2739_v9  ;;  %v1517_v8 = vpack.c.bf16 %v2739_v9, %v2737_v0  ;;  %v2741_v42 = vpop.eup %2740 }
 0x2e7   :  { %v1274_v39 = vmul.f32 1.442695, %v1162_v61  ;;  %1378 = vadd.xlane.f32.xlu0 %v2733_v48  ;;  %v1085_v51 = vpop.xlane.xlu1 %1084  ;;  %v4021_v61 = vld [vmem:[#allocation14_spill] sm:$0xff] }
 0x2e8   :  { %v1087_v5 = vpop.xlane.xlu0 %1086  ;;  %2754 = vpow2.f32 %v1272_v46  ;;  %v1163_v41 = vsub.f32 %v4013_v22, %v1085_v51  ;;  %2574 = vmatmul.mubr.bf16.gmra.mxu1 %v1517_v8  ;;  %v4022_v46 = vld [vmem:[#allocation15_spill] sm:$0xff] }
 0x2e9   :  { %v1164_v23 = vsub.f32 %v4014_v10, %v1087_v5  ;;  %v2743_v25 = vpop.eup %2742  ;;  %2756 = vpow2.f32 %v1274_v39 }
 0x2ea   :  { %v2745_v12 = vpop.eup %2744  ;;  %v1276_v28 = vmul.f32 1.442695, %v1163_v41  ;;  %1380 = vadd.xlane.f32.xlu1 %v2735_v3  ;;  %v1518_v1 = vpack.c.bf16 %v2743_v25, %v2741_v42  ;;  %v4023_v41 = vld [vmem:[#allocation17_spill] sm:$0xff] }
 0x2eb   :  { %v1278_v55 = vmul.f32 1.442695, %v1164_v23  ;;  %1390 = vadd.xlane.f32.xlu0 %v2745_v12  ;;  %v1089_v18 = vpop.xlane.xlu1 %1088  ;;  %v4024_v23 = vld [vmem:[#allocation16_spill] sm:$0xff] }
 0x2ec   :  { %v1091_v30 = vpop.xlane.xlu0 %1090  ;;  %2758 = vpow2.f32 %v1276_v28  ;;  %v1165_v24 = vsub.f32 %v4015_v59, %v1089_v18  ;;  %2577 = vmatprep.mubr.bf16.mxu1 %v1518_v1  ;;  %v4025_v59 = vld [vmem:[#allocation18_spill] sm:$0xff] }
 0x2ed   :  { %v1166_v20 = vsub.f32 %v4016_v35, %v1091_v30  ;;  %v2747_v19 = vpop.eup %2746  ;;  %2760 = vpow2.f32 %v1278_v55 }
 0x2ee   :  { %v1280_v34 = vmul.f32 1.442695, %v1165_v24  ;;  %1392 = vadd.xlane.f32.xlu1 %v2747_v19  ;;  %v1519_v36 = vpack.c.bf16 %v2747_v19, %v2745_v12  ;;  %v2749_v50 = vpop.eup %2748 }
 0x2ef   :  { %v1282_v15 = vmul.f32 1.442695, %v1166_v20  ;;  %1386 = vadd.xlane.f32.xlu0 %v2741_v42  ;;  %v1093_v14 = vpop.xlane.xlu1 %1092 }
 0x2f0   :  { %v1095_v4 = vpop.xlane.xlu0 %1094  ;;  %2762 = vpow2.f32 %v1280_v34  ;;  %v1167_v57 = vsub.f32 %v4017_v2, %v1093_v14  ;;  %2578 = vmatmul.mubr.bf16.gmra.mxu1 %v1519_v36 }
 0x2f1   :  { %v1168_v32 = vsub.f32 %v4018_v7, %v1095_v4  ;;  %v2751_v13 = vpop.eup %2750  ;;  %2764 = vpow2.f32 %v1282_v15 }
 0x2f2   :  { %v1284_v37 = vmul.f32 1.442695, %v1167_v57  ;;  %1388 = vadd.xlane.f32.xlu1 %v2743_v25  ;;  %v1520_v45 = vpack.c.bf16 %v2751_v13, %v2749_v50  ;;  %v3546_v47 = vpop.eup %2752 }
 0x2f3   :  { %v1286_v38 = vmul.f32 1.442695, %v1168_v32  ;;  %1394 = vadd.xlane.f32.xlu0 %v2749_v50  ;;  %v1097_v43 = vpop.xlane.xlu1 %1096  ;;  %v2658_v32 = vld [vmem:[%s3978_s4 + $0x8] sm:$0xff]  }
 0x2f4   :  { %v1099_v11 = vpop.xlane.xlu0 %1098  ;;  %2766 = vpow2.f32 %v1284_v37  ;;  %v1169_v44 = vsub.f32 %v4019_v6, %v1097_v43  ;;  %2581 = vmatprep.mubr.bf16.mxu1 %v1520_v45  ;;  %2605 = vmatprep.subr.bf16.mxu1 %v2658_v32 }
 0x2f5   :  { %v1170_v40 = vsub.f32 %v4020_v62, %v1099_v11  ;;  %v3550_v54 = vpop.eup %2754  ;;  %2768 = vpow2.f32 %v1286_v38  ;;  %2606 = vmatpush3.bf16.msra.mxu1 %v2658_v32 }
 0x2f6   :  { %v1288_v53 = vmul.f32 1.442695, %v1169_v44  ;;  %1396 = vadd.xlane.f32.xlu1 %v2751_v13  ;;  %v1521_v52 = vpack.c.bf16 %v3550_v54, %v3546_v47  ;;  %v2757_v17 = vpop.eup %2756 }
 0x2f7   :  { %v1290_v49 = vmul.f32 1.442695, %v1170_v40  ;;  %v1101_v48 = vpop.xlane.xlu1 %1100  ;;  %v2659_v40 = vld [vmem:[%s3978_s4] sm:$0xff]  }
 0x2f8   :  { %v1103_v63 = vpop.xlane.xlu0 %1102  ;;  %2770 = vpow2.f32 %v1288_v53  ;;  %v1171_v3 = vsub.f32 %v3466_v21, %v1101_v48  ;;  %2582 = vmatmul.mubr.bf16.gmra.mxu1 %v1521_v52  ;;  %2607 = vmatprep.subr.bf16.mxu1 %v2659_v40 }
 0x2f9   :  { %v1172_v0 = vsub.f32 %v3464_v26, %v1103_v63  ;;  %v2759_v58 = vpop.eup %2758  ;;  %2772 = vpow2.f32 %v1290_v49  ;;  %2608 = vmatpush3.bf16.msra.mxu1 %v2659_v40 }
 0x2fa   :  { %v2761_v16 = vpop.eup %2760  ;;  %v1292_v27 = vmul.f32 1.442695, %v1171_v3  ;;  %v1522_v31 = vpack.c.bf16 %v2759_v58, %v2757_v17 }
 0x2fb   :  { %v1294_v60 = vmul.f32 1.442695, %v1172_v0  ;;  %1406 = vadd.xlane.f32.xlu0 %v2761_v16  ;;  %v1105_v56 = vpop.xlane.xlu1 %1104 }
 0x2fc   :  { %v1107_v33 = vpop.xlane.xlu0 %1106  ;;  %2774 = vpow2.f32 %v1292_v27  ;;  %v1173_v9 = vsub.f32 %v4021_v61, %v1105_v56  ;;  %2585 = vmatprep.mubr.bf16.mxu1 %v1522_v31 }
 0x2fd   :  { %v1174_v8 = vsub.f32 %v4022_v46, %v1107_v33  ;;  %v2763_v39 = vpop.eup %2762  ;;  %2776 = vpow2.f32 %v1294_v60 }
 0x2fe   :  { %v1296_v21 = vmul.f32 1.442695, %v1173_v9  ;;  %1408 = vadd.xlane.f32.xlu1 %v2763_v39  ;;  %v1523_v26 = vpack.c.bf16 %v2763_v39, %v2761_v16  ;;  %v2765_v22 = vpop.eup %2764 }
 0x2ff   :  { %v1298_v51 = vmul.f32 1.442695, %v1174_v8  ;;  %1402 = vadd.xlane.f32.xlu0 %v2757_v17  ;;  %v1109_v5 = vpop.xlane.xlu1 %1108 }
 0x300   :  { %v1111_v42 = vpop.xlane.xlu0 %1110  ;;  %2778 = vpow2.f32 %v1296_v21  ;;  %v1175_v10 = vsub.f32 %v4023_v41, %v1109_v5  ;;  %2586 = vmatmul.mubr.bf16.gmra.mxu1 %v1523_v26 }
 0x301   :  { %v1176_v25 = vsub.f32 %v4024_v23, %v1111_v42  ;;  %v2767_v12 = vpop.eup %2766  ;;  %2780 = vpow2.f32 %v1298_v51 }
 0x302   :  { %v2769_v28 = vpop.eup %2768  ;;  %v1300_v55 = vmul.f32 1.442695, %v1175_v10  ;;  %1404 = vadd.xlane.f32.xlu1 %v2759_v58  ;;  %v1524_v1 = vpack.c.bf16 %v2767_v12, %v2765_v22 }
 0x303   :  { %v1302_v18 = vmul.f32 1.442695, %v1176_v25  ;;  %1414 = vadd.xlane.f32.xlu0 %v2769_v28  ;;  %v1113_v30 = vpop.xlane.xlu1 %1112 }
 0x304   :  { %2782 = vpow2.f32 %v1300_v55  ;;  %v1177_v24 = vsub.f32 %v4025_v59, %v1113_v30  ;;  %2589 = vmatprep.mubr.bf16.mxu1 %v1524_v1 }
 0x305   :  { %v2771_v35 = vpop.eup %2770  ;;  %2784 = vpow2.f32 %v1302_v18 }
 0x306   :  { %v1304_v20 = vmul.f32 1.442695, %v1177_v24  ;;  %1416 = vadd.xlane.f32.xlu1 %v2771_v35  ;;  %v1525_v19 = vpack.c.bf16 %v2771_v35, %v2769_v28  ;;  %v2773_v34 = vpop.eup %2772 }
 0x307   :  { %1410 = vadd.xlane.f32.xlu0 %v2765_v22 }
 0x308   :  { %2786 = vpow2.f32 %v1304_v20  ;;  %2590 = vmatmul.mubr.bf16.gmra.mxu1 %v1525_v19 }
 0x309   :  { %v2775_v36 = vpop.eup %2774 }
 0x30a   :  { %v2777_v15 = vpop.eup %2776  ;;  %1412 = vadd.xlane.f32.xlu1 %v2767_v12  ;;  %v1526_v14 = vpack.c.bf16 %v2775_v36, %v2773_v34 }
 0x30b   :  { %1422 = vadd.xlane.f32.xlu0 %v2777_v15 }
 0x30c   :  { %2593 = vmatprep.mubr.bf16.mxu1 %v1526_v14 }
 0x30d   :  { %v2779_v4 = vpop.eup %2778 }
 0x30e   :  { %1424 = vadd.xlane.f32.xlu1 %v2779_v4  ;;  %v1527_v50 = vpack.c.bf16 %v2779_v4, %v2777_v15  ;;  %v2781_v2 = vpop.eup %2780 }
 0x30f   :  { %1418 = vadd.xlane.f32.xlu0 %v2773_v34 }
 0x310   :  { %2594 = vmatmul.mubr.bf16.gmra.mxu1 %v1527_v50 }
 0x311   :  { %v2783_v57 = vpop.eup %2782 }
 0x312   :  { %1420 = vadd.xlane.f32.xlu1 %v2775_v36  ;;  %v1528_v7 = vpack.c.bf16 %v2783_v57, %v2781_v2  ;;  %v2785_v13 = vpop.eup %2784 }
 0x313   :  { %1398 = vadd.xlane.f32.xlu0 %v3546_v47 }
 0x314   :  { %2597 = vmatprep.mubr.bf16.mxu1 %v1528_v7 }
 0x315   :  { %v2787_v29 = vpop.eup %2786 }
 0x316   :  { %1400 = vadd.xlane.f32.xlu1 %v3550_v54  ;;  %v1529_v37 = vpack.c.bf16 %v2787_v29, %v2785_v13 }
 0x317   :  { %1426 = vadd.xlane.f32.xlu0 %v2781_v2 }
 0x318   :  { %2598 = vmatmul.mubr.bf16.gmra.mxu1 %v1529_v37 }
 0x31a   :  { %1428 = vadd.xlane.f32.xlu1 %v2783_v57 }
 0x31b   :  { %1430 = vadd.xlane.f32.xlu0 %v2785_v13 }
 0x31d   :  { %v1311_v38 = vpop.xlane.xlu0 %1310 }
 0x31e   :  { %1432 = vadd.xlane.f32.xlu1 %v2787_v29  ;;  %2788 = vrcp.f32 %v1311_v38 }
 0x321   :  { %v1313_v45 = vpop.xlane.xlu1 %1312  ;;  %v1307_v43 = vpop.xlane.xlu0 %1306 }
 0x322   :  { %2790 = vrcp.f32 %v1307_v43 }
 0x323   :  { %2792 = vrcp.f32 %v1313_v45 }
 0x325   :  { %v1309_v11 = vpop.xlane.xlu1 %1308 }
 0x326   :  { %2794 = vrcp.f32 %v1309_v11 }
 0x32b   :  { %v2789_v46 = vpop.eup %2788 }
 0x32c   :  { %v1319_v47 = vpop.xlane.xlu0 %1318 }
 0x32d   :  { %2796 = vrcp.f32 %v1319_v47 }
 0x32f   :  { %v1321_v6 = vpop.xlane.xlu1 %1320  ;;  %v2791_v26 = vpop.eup %2790 }
 0x330   :  { %v1315_v44 = vpop.xlane.xlu0 %1314  ;;  %v2793_v42 = vpop.eup %2792 }
 0x331   :  { %2798 = vrcp.f32 %v1315_v44 }
 0x332   :  { %2800 = vrcp.f32 %v1321_v6 }
 0x333   :  { %v1317_v62 = vpop.xlane.xlu1 %1316  ;;  %v2795_v23 = vpop.eup %2794 }
 0x334   :  { %v1327_v54 = vpop.xlane.xlu0 %1326  ;;  %2802 = vrcp.f32 %v1317_v62 }
 0x335   :  { %2804 = vrcp.f32 %v1327_v54 }
 0x337   :  { %v1329_v53 = vpop.xlane.xlu1 %1328 }
 0x338   :  { %v1323_v52 = vpop.xlane.xlu0 %1322 }
 0x339   :  { %2806 = vrcp.f32 %v1323_v52 }
 0x33a   :  { %2808 = vrcp.f32 %v1329_v53  ;;  %v2797_v1 = vpop.eup %2796 }
 0x33b   :  { %v1325_v49 = vpop.xlane.xlu1 %1324 }
 0x33c   :  { %v1335_v48 = vpop.xlane.xlu0 %1334  ;;  %2810 = vrcp.f32 %v1325_v49 }
 0x33d   :  { %2812 = vrcp.f32 %v1335_v48 }
 0x33e   :  { %v2799_v24 = vpop.eup %2798 }
 0x33f   :  { %v1337_v63 = vpop.xlane.xlu1 %1336  ;;  %v2801_v19 = vpop.eup %2800 }
 0x340   :  { %v1331_v17 = vpop.xlane.xlu0 %1330 }
 0x341   :  { %2814 = vrcp.f32 %v1331_v17  ;;  %v2803_v14 = vpop.eup %2802 }
 0x342   :  { %2816 = vrcp.f32 %v1337_v63  ;;  %v2805_v57 = vpop.eup %2804 }
 0x343   :  { %v1333_v3 = vpop.xlane.xlu1 %1332 }
 0x344   :  { %v1343_v0 = vpop.xlane.xlu0 %1342  ;;  %2818 = vrcp.f32 %v1333_v3 }
 0x345   :  { %2820 = vrcp.f32 %v1343_v0 }
 0x346   :  { %v2807_v13 = vpop.eup %2806 }
 0x347   :  { %v3569_v58 = vpop.xlane.xlu1 %1344  ;;  %v2809_v45 = vpop.eup %2808 }
 0x348   :  { %v3571_v16 = vpop.xlane.xlu0 %1338 }
 0x349   :  { %2822 = vrcp.f32 %v3571_v16  ;;  %v2811_v6 = vpop.eup %2810 }
 0x34a   :  { %2824 = vrcp.f32 %v3569_v58  ;;  %v2813_v40 = vpop.eup %2812 }
 0x34b   :  { %v3573_v27 = vpop.xlane.xlu1 %1340 }
 0x34c   :  { %v3575_v60 = vpop.xlane.xlu0 %1350 }
 0x34d   :  { %2826 = vrcp.f32 %v3575_v60  ;;  %v3651_v60 = vld [vmem:[%s3981_s7] ss:$0 sm:$0xff] }
 0x34e   :  { %v2815_v49 = vpop.eup %2814 }
 0x34f   :  { %v3577_v31 = vpop.xlane.xlu1 %1352  ;;  %v2817_v3 = vpop.eup %2816 }
 0x350   :  { %v3579_v56 = vpop.xlane.xlu0 %1346 }
 0x351   :  { %2828 = vrcp.f32 %v3579_v56  ;;  %v2819_v16 = vpop.eup %2818  ;;  %v3656_v56 = vld [vmem:[%s3981_s7 + $0x1] ss:$0 sm:$0xff] }
 0x352   :  { %2830 = vrcp.f32 %v3577_v31 }
 0x353   :  { %v3581_v33 = vpop.xlane.xlu1 %1348 }
 0x354   :  { %v3583_v61 = vpop.xlane.xlu0 %1358 }
 0x355   :  { %2832 = vrcp.f32 %v3583_v61 }
 0x357   :  { %v3585_v9 = vpop.xlane.xlu1 %1360 }
 0x358   :  { %v3587_v8 = vpop.xlane.xlu0 %1354 }
 0x359   :  { %2834 = vrcp.f32 %v3587_v8 }
 0x35a   :  { %2836 = vrcp.f32 %v3585_v9 }
 0x35b   :  { %v3593_v22 = vpop.xlane.xlu1 %1356 }
 0x35c   :  { %v3597_v25 = vpop.xlane.xlu0 %1366 }
 0x35d   :  { %v2539_v39 = vpop.f32.mrf.mxu1  ;;  %2838 = vrcp.f32 %v3597_v25 }
 0x35e   :  { %v3589_v21 = vmul.f32 %v2789_v46, %v2539_v39 }
 0x35f   :  { %v1564_v51 = vpop.f32.mrf.mxu1  ;;  %v3601_v55 = vpop.xlane.xlu1 %1368 }
 0x360   :  { %v3591_v5 = vmul.f32 %v2791_v26, %v1564_v51  ;;  %v3603_v30 = vpop.xlane.xlu0 %1362  ;;  %v2821_v51 = vpop.eup %2820 }
 0x361   :  { %v2540_v41 = vpop.f32.mrf.mxu1  ;;  %v2823_v31 = vpop.eup %2822  ;;  %2840 = vrcp.f32 %v3603_v30 }
 0x362   :  { %v3595_v10 = vmul.f32 %v2793_v42, %v2540_v41  ;;  %2842 = vrcp.f32 %v3601_v55 }
 0x363   :  { %v1567_v12 = vpop.f32.mrf.mxu1  ;;  %v3609_v36 = vpop.xlane.xlu1 %1364  ;;  %2844 = vrcp.f32 %v3573_v27 }
 0x364   :  { %v3599_v28 = vmul.f32 %v2795_v23, %v1567_v12  ;;  %v3613_v50 = vpop.xlane.xlu0 %1374  ;;  %2846 = vrcp.f32 %v3581_v33 }
 0x365   :  { %2848 = vrcp.f32 %v3593_v22 }
 0x366   :  { %2850 = vrcp.f32 %v3609_v36 }
 0x367   :  { %v3619_v37 = vpop.xlane.xlu1 %1376  ;;  %2852 = vrcp.f32 %v3613_v50 }
 0x368   :  { %v2543_v18 = vpop.f32.mrf.mxu1  ;;  %v3624_v11 = vpop.xlane.xlu0 %1370  ;;  %2854 = vrcp.f32 %v3619_v37 }
 0x369   :  { %v3605_v59 = vmul.f32 %v2797_v1, %v2543_v18  ;;  %v1890_v1 = vmul.f32 %v3651_v60, %v3589_v21  ;;  %v1891_v21 = vmul.f32 %v3651_v60, %v3595_v10 }
 0x36a   :  { %v1580_v35 = vpop.f32.mrf.mxu1 }
 0x36b   :  { %v3607_v20 = vmul.f32 %v2799_v24, %v1580_v35  ;;  %v3631_v53 = vpop.xlane.xlu1 %1372  ;;  %v2825_v35 = vpop.eup %2824  ;;  %v1894_v9 = vmul.f32 %v3651_v60, %v3605_v59  ;;  %2856 = vrcp.f32 %v3624_v11 }
 0x36c   :  { %v2544_v34 = vpop.f32.mrf.mxu1  ;;  %v3636_v63 = vpop.xlane.xlu0 %1382 }
 0x36d   :  { %v3611_v15 = vmul.f32 %v2801_v19, %v2544_v34  ;;  %v1888_v34 = vmul.f32 %v3651_v60, %v3591_v5 }
 0x36e   :  { %v1583_v4 = vpop.f32.mrf.mxu1 }
 0x36f   :  { %v3615_v2 = vmul.f32 %v2803_v14, %v1583_v4  ;;  %v3644_v39 = vpop.xlane.xlu1 %1384 }
 0x370   :  { %v2547_v7 = vpop.f32.mrf.mxu1  ;;  %v3658_v41 = vpop.xlane.xlu0 %1378 }
 0x371   :  { %v3617_v32 = vmul.f32 %v2805_v57, %v2547_v7 }
 0x372   :  { %v1596_v29 = vpop.f32.mrf.mxu1 }
 0x373   :  { %v3621_v38 = vmul.f32 %v2807_v13, %v1596_v29  ;;  %v3667_v14 = vpop.xlane.xlu1 %1380  ;;  %v2827_v29 = vpop.eup %2826  ;;  %2858 = vrcp.f32 %v3631_v53 }
 0x374   :  { %v2548_v43 = vpop.f32.mrf.mxu1  ;;  %v3677_v13 = vpop.xlane.xlu0 %1390 }
 0x375   :  { %v3626_v47 = vmul.f32 %v2809_v45, %v2548_v43 }
 0x376   :  { %v1599_v44 = vpop.f32.mrf.mxu1 }
 0x377   :  { %v3629_v62 = vmul.f32 %v2811_v6, %v1599_v44  ;;  %v2829_v44 = vpop.eup %2828  ;;  %2860 = vrcp.f32 %v3636_v63 }
 0x378   :  { %v2551_v54 = vpop.f32.mrf.mxu1 }
 0x379   :  { %v3633_v52 = vmul.f32 %v2813_v40, %v2551_v54  ;;  %v3687_v54 = vpop.xlane.xlu1 %1392 }
 0x37a   :  { %v1612_v48 = vpop.f32.mrf.mxu1 }
 0x37b   :  { %v3638_v17 = vmul.f32 %v2815_v49, %v1612_v48  ;;  %v2831_v48 = vpop.eup %2830  ;;  %2862 = vrcp.f32 %v3644_v39 }
 0x37c   :  { %v2552_v0 = vpop.f32.mrf.mxu1 }
 0x37d   :  { %v3641_v58 = vmul.f32 %v2817_v3, %v2552_v0  ;;  %v1892_v0 = vmul.f32 %v3651_v60, %v3607_v20 }
 0x37e   :  { %v1615_v46 = vpop.f32.mrf.mxu1 }
 0x37f   :  { %v3646_v26 = vmul.f32 %v2819_v16, %v1615_v46  ;;  %v3693_v16 = vpop.xlane.xlu0 %1386 }
 0x380   :  { %v2555_v42 = vpop.f32.mrf.mxu1 }
 0x381   :  { %v1837_v23 = vmul.f32 %v2821_v51, %v2555_v42  ;;  %v1895_v42 = vmul.f32 %v3651_v60, %v3611_v15 }
 0x382   :  { %v1628_v12 = vpop.f32.mrf.mxu1 }
 0x383   :  { %v1911_v18 = vmul.f32 %v3656_v56, %v1837_v23  ;;  %v1835_v24 = vmul.f32 %v2823_v31, %v1628_v12  ;;  %v2833_v31 = vpop.eup %2832  ;;  %v3712_v55 = vpop.xlane.xlu0 %1394  ;;  %2864 = vrcp.f32 %v3658_v41 }
 0x384   :  { %v2556_v19 = vpop.f32.mrf.mxu1  ;;  %v2835_v12 = vpop.eup %2834  ;;  %2866 = vrcp.f32 %v3667_v14 }
 0x385   :  { %v3669_v4 = vadd.f32 %v1911_v18, %v1890_v1  ;;  %v1909_v57 = vmul.f32 %v3656_v56, %v1835_v24  ;;  %v1838_v61 = vmul.f32 %v2825_v35, %v2556_v19  ;;  %v3706_v1 = vpop.xlane.xlu1 %1388  ;;  %v1898_v19 = vmul.f32 %v3651_v60, %v3617_v32 }
 0x386   :  { %v3672_v7 = vpop.f32.mrf.mxu1  ;;  %v1899_v32 = vmul.f32 %v3651_v60, %v3626_v47 }
 0x387   :  { %v3679_v8 = vadd.f32 %v1909_v57, %v1888_v34  ;;  %v1912_v5 = vmul.f32 %v3656_v56, %v1838_v61  ;;  %v2837_v57 = vpop.eup %2836 }
 0x388   :  { %v2559_v45 = vpop.f32.mrf.mxu1 }
 0x389   :  { %v3682_v43 = vadd.f32 %v1912_v5, %v1891_v21  ;;  %v1841_v6 = vmul.f32 %v2827_v29, %v2559_v45  ;;  %v1896_v21 = vmul.f32 %v3651_v60, %v3621_v38 }
 0x38a   :  { %v1644_v40 = vpop.f32.mrf.mxu1 }
 0x38b   :  { %v1915_v10 = vmul.f32 %v3656_v56, %v1841_v6  ;;  %v1839_v49 = vmul.f32 %v2829_v44, %v1644_v40  ;;  %v3724_v44 = vpop.xlane.xlu1 %1396  ;;  %v1407_v40 = vpop.xlane.xlu0 %1406 }
 0x38c   :  { %v2560_v3 = vpop.f32.mrf.mxu1  ;;  %2868 = vrcp.f32 %v1407_v40 }
 0x38d   :  { %v3695_v46 = vadd.f32 %v1915_v10, %v1894_v9  ;;  %v1913_v25 = vmul.f32 %v3656_v56, %v1839_v49  ;;  %v1842_v51 = vmul.f32 %v2831_v48, %v2560_v3  ;;  %v2839_v49 = vpop.eup %2838  ;;  %2870 = vrcp.f32 %v3677_v13 }
 0x38e   :  { %v3698_v59 = vpop.f32.mrf.mxu1  ;;  %v2841_v38 = vpop.eup %2840 }
 0x38f   :  { %v3703_v23 = vadd.f32 %v1913_v25, %v1892_v0  ;;  %v1916_v30 = vmul.f32 %v3656_v56, %v1842_v51  ;;  %v1902_v51 = vmul.f32 %v3651_v60, %v3633_v52  ;;  %v1903_v52 = vmul.f32 %v3651_v60, %v3641_v58 }
 0x390   :  { %v2563_v20 = vpop.f32.mrf.mxu1 }
 0x391   :  { %v3708_v18 = vadd.f32 %v1916_v30, %v1895_v42  ;;  %v1845_v24 = vmul.f32 %v2833_v31, %v2563_v20  ;;  %v1409_v42 = vpop.xlane.xlu1 %1408  ;;  %v2843_v31 = vpop.eup %2842 }
 0x392   :  { %v1660_v35 = vpop.f32.mrf.mxu1  ;;  %v2845_v11 = vpop.eup %2844 }
 0x393   :  { %v1919_v15 = vmul.f32 %v3656_v56, %v1845_v24  ;;  %v1843_v34 = vmul.f32 %v2835_v12, %v1660_v35  ;;  %v1900_v12 = vmul.f32 %v3651_v60, %v3638_v17  ;;  %v1403_v24 = vpop.xlane.xlu0 %1402 }
 0x394   :  { %v2564_v61 = vpop.f32.mrf.mxu1  ;;  %2872 = vrcp.f32 %v1403_v24 }
 0x395   :  { %v3717_v5 = vadd.f32 %v1919_v15, %v1898_v19  ;;  %v1917_v29 = vmul.f32 %v3656_v56, %v1843_v34  ;;  %v1846_v45 = vmul.f32 %v2837_v57, %v2564_v61  ;;  %2874 = vrcp.f32 %v3687_v54 }
 0x396   :  { %v3720_v6 = vpop.f32.mrf.mxu1  ;;  %2876 = vrcp.f32 %v1409_v42  ;;  %v1836_v54 = vmul.f32 %v2845_v11, %v3672_v7 }
 0x397   :  { %v3726_v9 = vadd.f32 %v1917_v29, %v1896_v21  ;;  %v1920_v10 = vmul.f32 %v3656_v56, %v1846_v45  ;;  %v1405_v29 = vpop.xlane.xlu1 %1404 }
 0x398   :  { %v2567_v48 = vpop.f32.mrf.mxu1 }
 0x399   :  { %v3729_v3 = vadd.f32 %v1920_v10, %v1899_v32  ;;  %v1849_v0 = vmul.f32 %v2839_v49, %v2567_v48  ;;  %v1415_v32 = vpop.xlane.xlu0 %1414 }
 0x39a   :  { %v1676_v25 = vpop.f32.mrf.mxu1 }
 0x39b   :  { %v1923_v47 = vmul.f32 %v3656_v56, %v1849_v0  ;;  %v1847_v30 = vmul.f32 %v2841_v38, %v1676_v25  ;;  %v1417_v48 = vpop.xlane.xlu1 %1416 }
 0x39c   :  { %v2568_v20 = vpop.f32.mrf.mxu1 }
 0x39d   :  { %v3736_v35 = vadd.f32 %v1923_v47, %v1902_v51  ;;  %v1921_v19 = vmul.f32 %v3656_v56, %v1847_v30  ;;  %v1850_v15 = vmul.f32 %v2843_v31, %v2568_v20  ;;  %v1411_v38 = vpop.xlane.xlu0 %1410  ;;  %v2847_v51 = vpop.eup %2846  ;;  %2878 = vrcp.f32 %v3693_v16 }
 0x39e   :  { %v3739_v34 = vpop.f32.mrf.mxu1  ;;  %v2849_v47 = vpop.eup %2848  ;;  %2880 = vrcp.f32 %v1405_v29  ;;  %v1910_v29 = vmul.f32 %v3656_v56, %v1836_v54 }
 0x39f   :  { %4026 = vst [vmem:[#allocation5_spill] sm:$0xff] %v3736_v35  ;;  %v3743_v57 = vadd.f32 %v1921_v19, %v1900_v12  ;;  %v1924_v61 = vmul.f32 %v3656_v56, %v1850_v15  ;;  %v1413_v27 = vpop.xlane.xlu1 %1412  ;;  %v3784_v41 = vpop.eup %2850  ;;  %2882 = vrcp.f32 %v3706_v1 }
 0x3a0   :  { %v2571_v21 = vpop.f32.mrf.mxu1  ;;  %v2853_v14 = vpop.eup %2852  ;;  %2884 = vrcp.f32 %v1415_v32  ;;  %v3803_v32 = vld [vmem:[%s3981_s7 + $0x2] ss:$0 sm:$0xff] }
 0x3a1   :  { %4027 = vst [vmem:[#allocation7_spill] sm:$0xff] %v3743_v57  ;;  %v3746_v45 = vadd.f32 %v1924_v61, %v1903_v52  ;;  %v1423_v22 = vpop.xlane.xlu0 %1422  ;;  %v2855_v30 = vpop.eup %2854  ;;  %2886 = vrcp.f32 %v3712_v55  ;;  %v1853_v52 = vmul.f32 %v2853_v14, %v2571_v21 }
 0x3a2   :  { %v3748_v17 = vpop.f32.mrf.mxu1  ;;  %v2857_v31 = vpop.eup %2856  ;;  %2888 = vrcp.f32 %v1411_v38  ;;  %v1840_v38 = vmul.f32 %v2847_v51, %v3698_v59 }
 0x3a3   :  { %4028 = vst [vmem:[#allocation6_spill] sm:$0xff] %v3746_v45  ;;  %v1425_v37 = vpop.xlane.xlu1 %1424  ;;  %v2859_v12 = vpop.eup %2858  ;;  %2890 = vrcp.f32 %v3724_v44  ;;  %v1851_v44 = vmul.f32 %v2857_v31, %v3748_v17  ;;  %v1948_v59 = vmul.f32 %v3803_v32, %v1853_v52  ;;  %v3819_v17 = vld [vmem:[%s3981_s7 + $0x3] ss:$0 sm:$0xff] }
 0x3a4   :  { %v3750_v10 = vpop.f32.mrf.mxu1  ;;  %v2861_v19 = vpop.eup %2860  ;;  %2892 = vrcp.f32 %v1417_v48  ;;  %v1889_v48 = vmul.f32 %v3651_v60, %v3599_v28  ;;  %v1914_v31 = vmul.f32 %v3656_v56, %v1840_v38 }
 0x3a5   :  { %v1419_v63 = vpop.xlane.xlu0 %1418  ;;  %v2863_v16 = vpop.eup %2862  ;;  %v1854_v55 = vmul.f32 %v2855_v30, %v3750_v10  ;;  %2894 = vrcp.f32 %v1413_v27  ;;  %v1893_v10 = vmul.f32 %v3651_v60, %v3615_v2  ;;  %v1946_v2 = vmul.f32 %v3803_v32, %v1851_v44 }
 0x3a6   :  { %v3752_v49 = vpop.f32.mrf.mxu1  ;;  %v2865_v15 = vpop.eup %2864  ;;  %2896 = vrcp.f32 %v1423_v22  ;;  %v1926_v51 = vadd.f32 %v1910_v29, %v1889_v48 }
 0x3a7   :  { %v1421_v13 = vpop.xlane.xlu1 %1420  ;;  %v2867_v1 = vpop.eup %2866  ;;  %v1852_v21 = vmul.f32 %v2859_v12, %v3752_v49  ;;  %2898 = vrcp.f32 %v1425_v37  ;;  %v1949_v28 = vmul.f32 %v3803_v32, %v1854_v55 }
 0x3a8   :  { %v3756_v58 = vpop.f32.mrf.mxu1  ;;  %v2869_v11 = vpop.eup %2868  ;;  %2900 = vrcp.f32 %v1419_v63 }
 0x3a9   :  { %v1399_v24 = vpop.xlane.xlu0 %1398  ;;  %v3809_v57 = vpop.eup %2870  ;;  %2902 = vrcp.f32 %v1421_v13  ;;  %v1947_v37 = vmul.f32 %v3803_v32, %v1852_v21  ;;  %v1857_v13 = vmul.f32 %v2861_v19, %v3756_v58 }
 0x3aa   :  { %v3760_v0 = vpop.f32.mrf.mxu1  ;;  %v2873_v35 = vpop.eup %2872  ;;  %2904 = vrcp.f32 %v1399_v24 }
 0x3ab   :  { %v1401_v7 = vpop.xlane.xlu1 %1400  ;;  %v3821_v27 = vpop.eup %2874 }
 0x3ac   :  { %v3764_v25 = vpop.f32.mrf.mxu1  ;;  %v2877_v30 = vpop.eup %2876  ;;  %2906 = vrcp.f32 %v1401_v7  ;;  %v1963_v7 = vadd.f32 %v1947_v37, %v1926_v51 }
 0x3ad   :  { %v1427_v54 = vpop.xlane.xlu0 %1426  ;;  %v3827_v52 = vpop.eup %2878  ;;  %v1858_v38 = vmul.f32 %v2863_v16, %v3764_v25 }
 0x3ae   :  { %v3768_v33 = vpop.f32.mrf.mxu1  ;;  %v2881_v55 = vpop.eup %2880 }
 0x3af   :  { %v2883_v21 = vpop.eup %2882  ;;  %v1856_v58 = vmul.f32 %v2867_v1, %v3768_v33 }
 0x3b0   :  { %v3772_v36 = vpop.f32.mrf.mxu1 }
 0x3b1   :  { %v1431_v48 = vpop.xlane.xlu0 %1430 }
 0x3b2   :  { %v3776_v50 = vpop.f32.mrf.mxu1  ;;  %2908 = vrcp.f32 %v1431_v48 }
 0x3b3   :  { %2910 = vrcp.f32 %v1427_v54 }
 0x3b4   :  { %v3779_v53 = vpop.f32.mrf.mxu1 }
 0x3b5   :  { %v1862_v54 = vmul.f32 %v3821_v27, %v3779_v53 }
 0x3b6   :  { %v3782_v39 = vpop.f32.mrf.mxu1 }
 0x3b8   :  { %v3787_v40 = vpop.f32.mrf.mxu1 }
 0x3ba   :  { %v3790_v20 = vpop.f32.mrf.mxu1 }
 0x3bc   :  { %v3794_v42 = vpop.f32.mrf.mxu1 }
 0x3be   :  { %v3797_v61 = vpop.f32.mrf.mxu1 }
 0x3c0   :  { %v2587_v14 = vpop.f32.mrf.mxu1 }
 0x3c1   :  { %v1869_v45 = vmul.f32 %v2869_v11, %v2587_v14  ;;  %v1844_v11 = vmul.f32 %v2849_v47, %v3720_v6  ;;  %v1429_v14 = vpop.xlane.xlu1 %1428 }
 0x3c2   :  { %v1756_v49 = vpop.f32.mrf.mxu1  ;;  %2912 = vrcp.f32 %v1429_v14 }
 0x3c3   :  { %v1867_v22 = vmul.f32 %v2873_v35, %v1756_v49  ;;  %v1985_v63 = vmul.f32 %v3819_v17, %v1869_v45  ;;  %v1964_v35 = vadd.f32 %v1948_v59, %v3669_v4  ;;  %v1965_v49 = vadd.f32 %v1949_v28, %v3682_v43  ;;  %v2885_v45 = vpop.eup %2884 }
 0x3c4   :  { %v2588_v12 = vpop.f32.mrf.mxu1  ;;  %v1855_v4 = vmul.f32 %v2865_v15, %v3760_v0  ;;  %v3840_v25 = vpop.eup %2886 }
 0x3c5   :  { %v1870_v29 = vmul.f32 %v2877_v30, %v2588_v12  ;;  %v1983_v6 = vmul.f32 %v3819_v17, %v1867_v22  ;;  %v1962_v30 = vadd.f32 %v1946_v2, %v3679_v8  ;;  %v2001_v16 = vadd.f32 %v1985_v63, %v1964_v35  ;;  %v2889_v22 = vpop.eup %2888  ;;  %v1433_v0 = vpop.xlane.xlu1 %1432 }
 0x3c6   :  { %v1759_v44 = vpop.f32.mrf.mxu1  ;;  %v1930_v12 = vadd.f32 %v1914_v31, %v1893_v10  ;;  %v1953_v8 = vmul.f32 %v3803_v32, %v1858_v38  ;;  %v3845_v2 = vpop.eup %2890  ;;  %v1950_v35 = vmul.f32 %v3803_v32, %v1855_v4  ;;  %v1951_v10 = vmul.f32 %v3803_v32, %v1856_v58 }
 0x3c7   :  { %v1986_v47 = vmul.f32 %v3819_v17, %v1870_v29  ;;  %v1868_v24 = vmul.f32 %v2881_v55, %v1759_v44  ;;  %v1952_v29 = vmul.f32 %v3803_v32, %v1857_v13  ;;  %v1999_v33 = vadd.f32 %v1983_v6, %v1962_v30  ;;  %v2893_v63 = vpop.eup %2892 }
 0x3c8   :  { %v2591_v19 = vpop.f32.mrf.mxu1  ;;  %v1918_v55 = vmul.f32 %v3656_v56, %v1844_v11  ;;  %v2895_v13 = vpop.eup %2894  ;;  %2914 = vrcp.f32 %v1433_v0  ;;  %v1967_v58 = vadd.f32 %v1951_v10, %v1930_v12 }
 0x3c9   :  { %v2002_v59 = vadd.f32 %v1986_v47, %v1965_v49  ;;  %v1984_v43 = vmul.f32 %v3819_v17, %v1868_v24  ;;  %v1873_v28 = vmul.f32 %v2885_v45, %v2591_v19  ;;  %v2897_v49 = vpop.eup %2896  ;;  %v1968_v6 = vadd.f32 %v1952_v29, %v3695_v46 }
 0x3ca   :  { %v1772_v51 = vpop.f32.mrf.mxu1  ;;  %v1861_v47 = vmul.f32 %v3809_v57, %v3772_v36  ;;  %v2899_v24 = vpop.eup %2898  ;;  %v1969_v45 = vadd.f32 %v1953_v8, %v3708_v18  ;;  %v1966_v46 = vadd.f32 %v1950_v35, %v3703_v23  ;;  %v1859_v57 = vmul.f32 %v3827_v52, %v3776_v50 }
 0x3cb   :  { %v2016_v15 = vpack.c.bf16 %v2002_v59, %v2001_v16  ;;  %v2000_v1 = vadd.f32 %v1984_v43, %v1963_v7  ;;  %v1871_v37 = vmul.f32 %v2889_v22, %v1772_v51  ;;  %v1989_v44 = vmul.f32 %v3819_v17, %v1873_v28  ;;  %v2901_v4 = vpop.eup %2900 }
 0x3cc   :  { %v2592_v31 = vpop.f32.mrf.mxu1  ;;  %v1860_v36 = vmul.f32 %v2883_v21, %v3782_v39  ;;  %v2903_v18 = vpop.eup %2902  ;;  %v1897_v28 = vmul.f32 %v3651_v60, %v3629_v62  ;;  %v1956_v23 = vmul.f32 %v3803_v32, %v1861_v47  ;;  %v1957_v22 = vmul.f32 %v3803_v32, %v1862_v54 }
 0x3cd   :  { %v2015_v38 = vpack.c.bf16 %v2000_v1, %v1999_v33  ;;  %v1874_v48 = vmul.f32 %v2893_v63, %v2592_v31  ;;  %v1987_v14 = vmul.f32 %v3819_v17, %v1871_v37  ;;  %v2005_v27 = vadd.f32 %v1989_v44, %v1968_v6  ;;  %v2905_v43 = vpop.eup %2904 }
 0x3ce   :  { %v1775_v11 = vpop.f32.mrf.mxu1  ;;  %v2907_v52 = vpop.eup %2906  ;;  %v1954_v8 = vmul.f32 %v3803_v32, %v1859_v57  ;;  %v1955_v51 = vmul.f32 %v3803_v32, %v1860_v36  ;;  %v1934_v33 = vadd.f32 %v1918_v55, %v1897_v28  ;;  %v1848_v37 = vmul.f32 %v3784_v41, %v3739_v34 }
 0x3cf   :  { %v1990_v30 = vmul.f32 %v3819_v17, %v1874_v48  ;;  %v1872_v7 = vmul.f32 %v2895_v13, %v1775_v11  ;;  %2609 = vmatprep.mubr.msk.bf16.mxu1 %vm576_vm1, %v2015_v38  ;;  %v2003_v39 = vadd.f32 %v1987_v14, %v1966_v46  ;;  %v1972_v63 = vadd.f32 %v1956_v23, %v3717_v5  ;;  %v2909_v13 = vpop.eup %2908 }
 0x3d0   :  { %v2595_v53 = vpop.f32.mrf.mxu1  ;;  %2610 = vmatmul.mubr.msk.bf16.vlgmr.msra.gmra.mxu1 %vm576_vm1, %v2016_v15  ;;  %v1865_v35 = vmul.f32 %v2905_v43, %v3787_v40  ;;  %v1866_v10 = vmul.f32 %v2907_v52, %v3794_v42  ;;  %v1973_v38 = vadd.f32 %v1957_v22, %v3729_v3  ;;  %v1971_v34 = vadd.f32 %v1955_v51, %v1934_v33  ;;  %v2911_v3 = vpop.eup %2910 }
 0x3d1   :  { %v2006_v19 = vadd.f32 %v1990_v30, %v1969_v45  ;;  %v1988_v16 = vmul.f32 %v3819_v17, %v1872_v7  ;;  %v1877_v59 = vmul.f32 %v2897_v49, %v2595_v53  ;;  %v1970_v49 = vadd.f32 %v1954_v8, %v3726_v9  ;;  %v2913_v11 = vpop.eup %2912  ;;  %v2276_v8 = vld [vmem:[%s3979_s5] ss:$0 sm:$0xff] }
 0x3d2   :  { %v1788_v50 = vpop.f32.mrf.mxu1  ;;  %v1863_v5 = vmul.f32 %v3840_v25, %v3790_v20  ;;  %v1864_v41 = vmul.f32 %v3845_v2, %v3797_v61  ;;  %v1960_v9 = vmul.f32 %v3803_v32, %v1865_v35  ;;  %v1961_v45 = vmul.f32 %v3803_v32, %v1866_v10 }
 0x3d3   :  { %v2018_v21 = vpack.c.bf16 %v2006_v19, %v2005_v27  ;;  %v2004_v12 = vadd.f32 %v1988_v16, %v1967_v58  ;;  %v1875_v29 = vmul.f32 %v2901_v4, %v1788_v50  ;;  %v1993_v1 = vmul.f32 %v3819_v17, %v1877_v59  ;;  %v4030_v16 = vld [vmem:[#allocation6_spill] sm:$0xff] }
 0x3d4   :  { %v2596_v0 = vpop.f32.mrf.mxu1  ;;  %v1901_v7 = vmul.f32 %v3651_v60, %v3646_v26  ;;  %v1958_v4 = vmul.f32 %v3803_v32, %v1863_v5  ;;  %v1959_v58 = vmul.f32 %v3803_v32, %v1864_v41  ;;  %v1977_v59 = vadd.f32 %v1961_v45, %v4030_v16  ;;  %v4031_v60 = vld [vmem:[#allocation7_spill] sm:$0xff] }
 0x3d5   :  { %v2017_v15 = vpack.c.bf16 %v2004_v12, %v2003_v39  ;;  %v1878_v62 = vmul.f32 %v2899_v24, %v2596_v0  ;;  %v1991_v44 = vmul.f32 %v3819_v17, %v1875_v29  ;;  %v2009_v42 = vadd.f32 %v1993_v1, %v1972_v63  ;;  %v2915_v25 = vpop.eup %2914 }
 0x3d6   :  { %v1791_v31 = vpop.f32.mrf.mxu1  ;;  %v1922_v24 = vmul.f32 %v3656_v56, %v1848_v37  ;;  %v1974_v23 = vadd.f32 %v1958_v4, %v4031_v60 }
 0x3d7   :  { %v1994_v55 = vmul.f32 %v3819_v17, %v1878_v62  ;;  %v1876_v48 = vmul.f32 %v2903_v18, %v1791_v31  ;;  %2613 = vmatprep.mubr.msk.bf16.mxu1 %vm576_vm1, %v2017_v15  ;;  %v2007_v14 = vadd.f32 %v1991_v44, %v1970_v49  ;;  %v4029_v18 = vld [vmem:[#allocation5_spill] sm:$0xff] }
 0x3d8   :  { %v2599_v40 = vpop.f32.mrf.mxu1  ;;  %2614 = vmatmul.mubr.msk.bf16.gmra.mxu1 %vm576_vm1, %v2018_v21  ;;  %v1938_v53 = vadd.f32 %v1922_v24, %v1901_v7  ;;  %v1976_v27 = vadd.f32 %v1960_v9, %v4029_v18 }
 0x3d9   :  { %v2010_v6 = vadd.f32 %v1994_v55, %v1973_v38  ;;  %v1992_v47 = vmul.f32 %v3819_v17, %v1876_v48  ;;  %v1881_v54 = vmul.f32 %v2909_v13, %v2599_v40 }
 0x3da   :  { %v1804_v20 = vpop.f32.mrf.mxu1  ;;  %v1975_v32 = vadd.f32 %v1959_v58, %v1938_v53 }
 0x3db   :  { %v2020_v61 = vpack.c.bf16 %v2010_v6, %v2009_v42  ;;  %v2008_v2 = vadd.f32 %v1992_v47, %v1971_v34  ;;  %v1879_v30 = vmul.f32 %v2911_v3, %v1804_v20  ;;  %v1997_v56 = vmul.f32 %v3819_v17, %v1881_v54 }
 0x3dc   :  { %v2600_v46 = vpop.f32.mrf.mxu1 }
 0x3dd   :  { %v2019_v57 = vpack.c.bf16 %v2008_v2, %v2007_v14  ;;  %v1882_v36 = vmul.f32 %v2915_v25, %v2600_v46  ;;  %v1995_v43 = vmul.f32 %v3819_v17, %v1879_v30  ;;  %v2013_v22 = vadd.f32 %v1997_v56, %v1976_v27 }
 0x3de   :  { %v1807_v19 = vpop.f32.mrf.mxu1 }
 0x3df   :  { %v1998_v28 = vmul.f32 %v3819_v17, %v1882_v36  ;;  %v1880_v26 = vmul.f32 %v2913_v11, %v1807_v19  ;;  %2617 = vmatprep.mubr.msk.bf16.mxu1 %vm576_vm1, %v2019_v57  ;;  %v2011_v39 = vadd.f32 %v1995_v43, %v1974_v23 }
 0x3e0   :  { %2618 = vmatmul.mubr.msk.bf16.gmra.mxu1 %vm576_vm1, %v2020_v61 }
 0x3e1   :  { %v2014_v50 = vadd.f32 %v1998_v28, %v1977_v59  ;;  %v1996_v52 = vmul.f32 %v3819_v17, %v1880_v26 }
 0x3e3   :  { %v2022_v21 = vpack.c.bf16 %v2014_v50, %v2013_v22  ;;  %v2012_v12 = vadd.f32 %v1996_v52, %v1975_v32 }
 0x3e5   :  { %v2021_v29 = vpack.c.bf16 %v2012_v12, %v2011_v39 }
 0x3e7   :  { %2621 = vmatprep.mubr.msk.bf16.mxu1 %vm576_vm1, %v2021_v29 }
 0x3e8   :  { %2622 = vmatmul.mubr.msk.bf16.gmra.mxu1 %vm576_vm1, %v2022_v21 }
 0x490   :  { %v2611_v51 = vpop.f32.mrf.mxu1 }
 0x491   :  { %v2129_v0 = vadd.f32 %v2611_v51, %v2276_v8 }
 0x492   :  { %v2120_v33 = vpop.f32.mrf.mxu1 }
 0x493   :  { %2185 = vst.msk [vmem:[%s3983_s9 + $0x10] sm:$0xff] %vm119_vm0, %v2129_v0  ;;  %v2121_v17 = vadd.f32 %v2276_v8, %v2120_v33 }
 0x494   :  { %v2612_v15 = vpop.f32.mrf.mxu1 }
 0x495   :  { %2183 = vst.msk [vmem:[%s3983_s9] sm:$0xff] %vm119_vm0, %v2121_v17  ;;  %v2132_v1 = vadd.f32 %v2612_v15, %v2276_v8 }
 0x496   :  { %v2123_v62 = vpop.f32.mrf.mxu1 }
 0x497   :  { %2186 = vst.msk [vmem:[%s3983_s9 + $0x18] sm:$0xff] %vm119_vm0, %v2132_v1  ;;  %v2124_v37 = vadd.f32 %v2276_v8, %v2123_v62 }
 0x498   :  { %v2615_v63 = vpop.f32.mrf.mxu1 }
 0x499   :  { %2184 = vst.msk [vmem:[%s3983_s9 + $0x8] sm:$0xff] %vm119_vm0, %v2124_v37  ;;  %v2145_v35 = vadd.f32 %v2615_v63, %v2276_v8 }
 0x49a   :  { %v2136_v10 = vpop.f32.mrf.mxu1 }
 0x49b   :  { %2189 = vst.msk [vmem:[%s3983_s9 + $0x30] sm:$0xff] %vm119_vm0, %v2145_v35  ;;  %v2137_v31 = vadd.f32 %v2276_v8, %v2136_v10 }
 0x49c   :  { %v2616_v13 = vpop.f32.mrf.mxu1 }
 0x49d   :  { %2187 = vst.msk [vmem:[%s3983_s9 + $0x20] sm:$0xff] %vm119_vm0, %v2137_v31  ;;  %v2148_v38 = vadd.f32 %v2616_v13, %v2276_v8 }
 0x49e   :  { %v2139_v44 = vpop.f32.mrf.mxu1 }
 0x49f   :  { %2190 = vst.msk [vmem:[%s3983_s9 + $0x38] sm:$0xff] %vm119_vm0, %v2148_v38  ;;  %v2140_v55 = vadd.f32 %v2276_v8, %v2139_v44 }
 0x4a0   :  { %v2619_v48 = vpop.f32.mrf.mxu1 }
 0x4a1   :  { %2188 = vst.msk [vmem:[%s3983_s9 + $0x28] sm:$0xff] %vm119_vm0, %v2140_v55  ;;  %v2161_v49 = vadd.f32 %v2619_v48, %v2276_v8 }
 0x4a2   :  { %v2152_v34 = vpop.f32.mrf.mxu1 }
 0x4a3   :  { %2193 = vst.msk [vmem:[%s3983_s9 + $0x50] sm:$0xff] %vm119_vm0, %v2161_v49  ;;  %v2153_v5 = vadd.f32 %v2276_v8, %v2152_v34 }
 0x4a4   :  { %v2620_v41 = vpop.f32.mrf.mxu1 }
 0x4a5   :  { %2191 = vst.msk [vmem:[%s3983_s9 + $0x40] sm:$0xff] %vm119_vm0, %v2153_v5  ;;  %v2164_v40 = vadd.f32 %v2620_v41, %v2276_v8 }
 0x4a6   :  { %v2155_v3 = vpop.f32.mrf.mxu1 }
 0x4a7   :  { %2194 = vst.msk [vmem:[%s3983_s9 + $0x58] sm:$0xff] %vm119_vm0, %v2164_v40  ;;  %v2156_v42 = vadd.f32 %v2276_v8, %v2155_v3 }
 0x4a8   :  { %v2623_v6 = vpop.f32.mrf.mxu1 }
 0x4a9   :  { %2192 = vst.msk [vmem:[%s3983_s9 + $0x48] sm:$0xff] %vm119_vm0, %v2156_v42  ;;  %v2177_v47 = vadd.f32 %v2623_v6, %v2276_v8 }
 0x4aa   :  { %v2168_v54 = vpop.f32.mrf.mxu1 }
 0x4ab   :  { %2197 = vst.msk [vmem:[%s3983_s9 + $0x70] sm:$0xff] %vm119_vm0, %v2177_v47  ;;  %v2169_v11 = vadd.f32 %v2276_v8, %v2168_v54 }
 0x4ac   :  { %v2624_v24 = vpop.f32.mrf.mxu1 }
 0x4ad   :  { %2195 = vst.msk [vmem:[%s3983_s9 + $0x60] sm:$0xff] %vm119_vm0, %v2169_v11  ;;  %v2180_v9 = vadd.f32 %v2624_v24, %v2276_v8 }
 0x4ae   :  { %v2171_v45 = vpop.f32.mrf.mxu1 }
 0x4af   :  { %2198 = vst.msk [vmem:[%s3983_s9 + $0x78] sm:$0xff] %vm119_vm0, %v2180_v9  ;;  %v2172_v20 = vadd.f32 %v2276_v8, %v2171_v45 }
 0x4b1   :  { %2196 = vst.msk [vmem:[%s3983_s9 + $0x68] sm:$0xff] %vm119_vm0, %v2172_v20 }
 0x4b2   :  { %2203 = vsyncpa [#allocation3], 1 }

</bundles_post_ra>
